<compile_context>
chip_gen: v7x
topology: tpu7x:2x2x1
jax: 0.10.0
libtpu: 0.0.40
codegen_flags: <defaults>
</compile_context>

<pallas_src>
import jax
import jax.numpy as jnp
from jax.experimental import pallas as pl
from jax.experimental.pallas import tpu as pltpu


def _round_up(x, m):
    return ((x + m - 1) // m) * m


def _choose_pixel_tile(crows, hidden, halo, m, budget_bytes=10 << 20):
    """Largest 128-multiple lane tile fitting the VMEM budget, then shrunk
    until the grid has >= 4 tiles (v7x megacore sharding + pipeline overlap)."""
    def footprint(tm):
        stream = (3 * 2 * crows * tm * 2        # 3 x||h blocks, double-buffered, bf16
                  + 2 * hidden * tm * 4         # c, double-buffered, f32
                  + 2 * 2 * hidden * tm * 4)    # ch, cc outputs, double-buffered, f32
        window = crows * (tm + 2 * halo) * 2    # in-kernel halo window (bf16 scratch)
        gates = 4 * hidden * tm * 4             # gates accumulator temporary (f32)
        return stream + window + gates

    tm = 2048
    while tm > 128 and footprint(tm) > budget_bytes:
        tm //= 2
    while tm > 128 and pl.cdiv(m, tm) < 4:
        tm //= 2
    return max(tm, halo)


def conv_lstm_cell(x, h, c, wx, bx, wh):
    """Forward of PyTorch ConvLSTMCell (3x3 kernels, stride 1, circular 'same' pad).

    Args:
      x : (N, Cin, H, W) input.
      h : (N, Ch,  H, W) previous hidden state.
      c : (N, Ch,  H, W) previous cell state.
      wx: (4*Ch, Cin, 3, 3) stacked [Wxi, Wxf, Wxc, Wxo] weights.
      bx: (4*Ch,)           stacked [bxi, bxf, bxc, bxo] biases.
      wh: (4*Ch, Ch, 3, 3)  stacked [Whi, Whf, Whc, Who] weights (no bias).

    Returns:
      (ch, cc): new hidden / cell states, each (N, Ch, H, W).
    """
    # TODO(synk): input_stride != 1 / input_kernel_size != 3 not implemented
    # (PhyCRNet's ConvLSTM layer uses input_kernel_size=3, stride=1, padding=1).
    n, cin, hh, ww = x.shape
    hidden = c.shape[1]
    if wx.shape[2:] != (3, 3) or wh.shape[2:] != (3, 3):
        raise NotImplementedError("only 3x3 stride-1 circular convolutions")

    f32, bf16 = jnp.float32, jnp.bfloat16
    hp, wp = hh + 2, ww + 2                 # circularly padded spatial dims
    crows = cin + hidden                    # stacked x||h channel rows
    m = n * hp * wp                         # padded pixels (lane axis)

    # ---- wrapper layout plumbing: channels on sublanes, padded pixels on lanes
    xh = jnp.concatenate([x, h], axis=1).astype(f32)
    xh = jnp.pad(xh, ((0, 0), (0, 0), (1, 1), (1, 1)), mode="wrap")
    xh = xh.transpose(1, 0, 2, 3).reshape(crows, m).astype(bf16)

    c_slab = jnp.pad(c.astype(f32), ((0, 0), (0, 0), (1, 1), (1, 1)), mode="wrap")
    c_slab = c_slab.transpose(1, 0, 2, 3).reshape(hidden, m)

    # Per-tap fused weights: tap t = 3*ky + kx -> (4*Ch, Cin+Ch) block.
    w_all = jnp.concatenate([wx, wh], axis=1).astype(f32)          # (4Ch, crows, 3, 3)
    w_taps = w_all.transpose(2, 3, 0, 1).reshape(9, 4 * hidden, crows).astype(bf16)
    b_col = bx.astype(f32).reshape(4 * hidden, 1)

    # ---- tiling
    halo = _round_up(wp + 1, 128)           # max |tap offset| = wp + 1
    tm = _choose_pixel_tile(crows, hidden, halo, m)
    grid_n = pl.cdiv(m, tm)
    if grid_n % 2:
        grid_n += 1                         # even grid for v7x's two TensorCores
    m_pad = grid_n * tm

    # Data lives at lanes [tm, tm + m); one zero block on each side so the halo
    # block index maps (i, i+2) never leave the array.
    xh_slab = jnp.pad(xh, ((0, 0), (tm, m_pad - m + tm)))
    c_slab = jnp.pad(c_slab, ((0, 0), (0, m_pad - m)))

    # Tap offsets in padded, flattened pixel coordinates.
    offsets = tuple((ky - 1) * wp + (kx - 1) for ky in range(3) for kx in range(3))

    def kernel(w_ref, b_ref, xh_l_ref, xh_m_ref, xh_r_ref, c_ref,
               ch_ref, cc_ref, win_ref):
        # Halo window: [left halo | tile | right halo] of the x||h channel stack.
        win_ref[:, 0:halo] = xh_l_ref[:, tm - halo:tm]
        win_ref[:, halo:halo + tm] = xh_m_ref[...]
        win_ref[:, halo + tm:halo + 2 * tm if False else halo + tm + halo] = \
            xh_r_ref[:, 0:halo]

        # 9 shifted lane slices -> 9 accumulating MXU matmuls, bias folded into
        # the head of the chain.  bf16 operands, f32 accumulation.
        d0 = halo + offsets[0]
        gates = b_ref[...] + jnp.dot(w_ref[0], win_ref[:, d0:d0 + tm],
                                     preferred_element_type=jnp.float32)
        for t in range(1, 9):
            d = halo + offsets[t]
            gates = gates + jnp.dot(w_ref[t], win_ref[:, d:d + tm],
                                    preferred_element_type=jnp.float32)

        # Gate nonlinearities: sigmoid(x) = 0.5*(1 + tanh(0.5*x)) -> one EUP op.
        i_g = 0.5 * (1.0 + jnp.tanh(0.5 * gates[0 * hidden:1 * hidden]))
        f_g = 0.5 * (1.0 + jnp.tanh(0.5 * gates[1 * hidden:2 * hidden]))
        g_g = jnp.tanh(gates[2 * hidden:3 * hidden])
        o_g = 0.5 * (1.0 + jnp.tanh(0.5 * gates[3 * hidden:4 * hidden]))

        cc = f_g * c_ref[...] + i_g * g_g
        cc_ref[...] = cc
        ch_ref[...] = o_g * jnp.tanh(cc)

    tile = lambda i: (0, i)

    ch_slab, cc_slab = pl.pallas_call(
        kernel,
        out_shape=(jax.ShapeDtypeStruct((hidden, m_pad), f32),
                   jax.ShapeDtypeStruct((hidden, m_pad), f32)),
        grid=(grid_n,),
        in_specs=[
            pl.BlockSpec((9, 4 * hidden, crows), lambda i: (0, 0, 0)),  # weights (resident)
            pl.BlockSpec((4 * hidden, 1), lambda i: (0, 0)),            # bias    (resident)
            pl.BlockSpec((crows, tm), lambda i: (0, i)),                # left neighbor block
            pl.BlockSpec((crows, tm), lambda i: (0, i + 1)),            # main tile
            pl.BlockSpec((crows, tm), lambda i: (0, i + 2)),            # right neighbor block
            pl.BlockSpec((hidden, tm), tile),                           # c
        ],
        out_specs=(pl.BlockSpec((hidden, tm), tile),                    # ch
                   pl.BlockSpec((hidden, tm), tile)),                   # cc
        scratch_shapes=[pltpu.VMEM((crows, tm + 2 * halo), bf16)],
        compiler_params=pltpu.CompilerParams(
            dimension_semantics=("parallel",),
            vmem_limit_bytes=32 * 1024 * 1024),
    )(w_taps, b_col, xh_slab, xh_slab, xh_slab, c_slab)

    # NOTE: in a recurrent loop, keep the (Ch, padded-pixel) slab layout between
    # steps and skip this NCHW conversion; it is done here to match the module.
    def unslab(o):
        o = o[:, :m].reshape(hidden, n, hp, wp)[:, :, 1:-1, 1:-1]
        return o.transpose(1, 0, 2, 3)

    return unslab(ch_slab), unslab(cc_slab)


# ----------------------------- pure-JAX reference -----------------------------

def _conv2d_circular(a, w, b=None):
    ph, pw = (w.shape[2] - 1) // 2, (w.shape[3] - 1) // 2
    ap = jnp.pad(a, ((0, 0), (0, 0), (ph, ph), (pw, pw)), mode="wrap")
    out = jax.lax.conv_general_dilated(
        ap, w, window_strides=(1, 1), padding="VALID",
        dimension_numbers=("NCHW", "OIHW", "NCHW"),
        precision=jax.lax.Precision.HIGHEST)
    if b is not None:
        out = out + b[None, :, None, None]
    return out


def _reference(x, h, c, wx, bx, wh):
    hidden = c.shape[1]
    sp = lambda a: [a[i * hidden:(i + 1) * hidden] for i in range(4)]
    wxi, wxf, wxc, wxo = sp(wx)
    bxi, bxf, bxc, bxo = sp(bx)
    whi, whf, whc, who = sp(wh)
    ci = jax.nn.sigmoid(_conv2d_circular(x, wxi, bxi) + _conv2d_circular(h, whi))
    cf = jax.nn.sigmoid(_conv2d_circular(x, wxf, bxf) + _conv2d_circular(h, whf))
    cc = cf * c + ci * jnp.tanh(_conv2d_circular(x, wxc, bxc) + _conv2d_circular(h, whc))
    co = jax.nn.sigmoid(_conv2d_circular(x, wxo, bxo) + _conv2d_circular(h, who))
    ch = co * jnp.tanh(cc)
    return ch, cc


if __name__ == "__main__":
    key = jax.random.PRNGKey(0)
    ks = jax.random.split(key, 11)

    # Small shapes consistent with the module's forward.
    n, cin, hidden, hh, ww = 2, 4, 32, 16, 16

    x = jax.random.normal(ks[0], (n, cin, hh, ww), dtype=jnp.float32)
    h = jax.random.normal(ks[1], (n, hidden, hh, ww), dtype=jnp.float32)
    c = jax.random.normal(ks[2], (n, hidden, hh, ww), dtype=jnp.float32)

    scale = 0.1
    wxi, wxf, wxc, wxo = (scale * jax.random.normal(k, (hidden, cin, 3, 3),
                                                    dtype=jnp.float32) for k in ks[3:7])
    whi, whf, whc, who = (scale * jax.random.normal(k, (hidden, hidden, 3, 3),
                                                    dtype=jnp.float32) for k in ks[7:11])
    # Bias init mirrors the module: zeros for i/f/c gates, ones for the o gate.
    bxi = jnp.zeros((hidden,), jnp.float32)
    bxf = jnp.zeros((hidden,), jnp.float32)
    bxc = jnp.zeros((hidden,), jnp.float32)
    bxo = jnp.ones((hidden,), jnp.float32)

    wx = jnp.concatenate([wxi, wxf, wxc, wxo], axis=0)   # (4*Ch, Cin, 3, 3)
    bx = jnp.concatenate([bxi, bxf, bxc, bxo], axis=0)   # (4*Ch,)
    wh = jnp.concatenate([whi, whf, whc, who], axis=0)   # (4*Ch, Ch, 3, 3)

    ch, cc = conv_lstm_cell(x, h, c, wx, bx, wh)
    ch, cc = jax.block_until_ready((ch, cc))
    assert ch.shape == (n, hidden, hh, ww) and cc.shape == (n, hidden, hh, ww)
    assert bool(jnp.all(jnp.isfinite(ch))) and bool(jnp.all(jnp.isfinite(cc)))

    # Matched-precision reference: the kernel streams x/h/weights as bf16 with
    # f32 accumulation, so round the reference operands the same way.
    rd = lambda a: a.astype(jnp.bfloat16).astype(jnp.float32)
    ch_ref, cc_ref = _reference(rd(x), rd(h), c, rd(wx), bx, rd(wh))
    assert jnp.allclose(ch, ch_ref, atol=2e-3, rtol=2e-3), \
        float(jnp.max(jnp.abs(ch - ch_ref)))
    assert jnp.allclose(cc, cc_ref, atol=2e-3, rtol=2e-3), \
        float(jnp.max(jnp.abs(cc - cc_ref)))

    # Loose sanity check against the full-f32 reference (bf16 operand rounding).
    ch_f32, cc_f32 = _reference(x, h, c, wx, bx, wh)
    assert jnp.allclose(ch, ch_f32, atol=5e-2, rtol=5e-2), \
        float(jnp.max(jnp.abs(ch - ch_f32)))
    assert jnp.allclose(cc, cc_f32, atol=5e-2, rtol=5e-2), \
        float(jnp.max(jnp.abs(cc - cc_f32)))

    print("KERNEL_OK")
</pallas_src>

<mosaic_0001>
module attributes {stable_mosaic.version = 11 : i64} {
  func.func @kernel(%arg0: i32, %arg1: memref<9x128x36xbf16, #tpu.memory_space<vmem>>, %arg2: memref<128x1xf32, #tpu.memory_space<vmem>>, %arg3: memref<36x128xbf16, #tpu.memory_space<vmem>>, %arg4: memref<36x128xbf16, #tpu.memory_space<vmem>>, %arg5: memref<36x128xbf16, #tpu.memory_space<vmem>>, %arg6: memref<32x128xf32, #tpu.memory_space<vmem>>, %arg7: memref<32x128xf32, #tpu.memory_space<vmem>>, %arg8: memref<32x128xf32, #tpu.memory_space<vmem>>, %arg9: memref<36x384xbf16, #tpu.memory_space<vmem>>) attributes {dimension_semantics = [#tpu.dimension_semantics<parallel>], iteration_bounds = array<i64: 6>, scalar_prefetch = 0 : i64, scratch_operands = 1 : i64, tpu.core_type = #tpu.core_type<tc>, window_params = [{pipeline_mode = #tpu.pipeline_mode<synchronous>, transform_indices = @transform_0, window_bounds = array<i64: 9, 128, 36>}, {pipeline_mode = #tpu.pipeline_mode<synchronous>, transform_indices = @transform_1, window_bounds = array<i64: 128, 1>}, {transform_indices = @transform_2, window_bounds = array<i64: 36, 128>}, {transform_indices = @transform_3, window_bounds = array<i64: 36, 128>}, {transform_indices = @transform_4, window_bounds = array<i64: 36, 128>}, {transform_indices = @transform_5, window_bounds = array<i64: 32, 128>}, {transform_indices = @transform_6, window_bounds = array<i64: 32, 128>}, {transform_indices = @transform_7, window_bounds = array<i64: 32, 128>}]} {
    %c0 = arith.constant 0 : index
    %c0_0 = arith.constant 0 : index
    %0 = vector.load %arg3[%c0, %c0_0] : memref<36x128xbf16, #tpu.memory_space<vmem>>, vector<36x128xbf16>
    %c0_1 = arith.constant 0 : index
    %c0_2 = arith.constant 0 : index
    %1 = vector.load %arg9[%c0_1, %c0_2] : memref<36x384xbf16, #tpu.memory_space<vmem>>, vector<36x128xbf16>
    tpu.vector_store %arg9[%c0_1, %c0_2], %0 {strides = array<i32>} : memref<36x384xbf16, #tpu.memory_space<vmem>>, vector<36x128xbf16>,
    %c0_3 = arith.constant 0 : index
    %c0_4 = arith.constant 0 : index
    %2 = vector.load %arg4[%c0_3, %c0_4] : memref<36x128xbf16, #tpu.memory_space<vmem>>, vector<36x128xbf16>
    %c0_5 = arith.constant 0 : index
    %c128 = arith.constant 128 : index
    %3 = vector.load %arg9[%c0_5, %c128] : memref<36x384xbf16, #tpu.memory_space<vmem>>, vector<36x128xbf16>
    tpu.vector_store %arg9[%c0_5, %c128], %2 {strides = array<i32>} : memref<36x384xbf16, #tpu.memory_space<vmem>>, vector<36x128xbf16>,
    %c0_6 = arith.constant 0 : index
    %c0_7 = arith.constant 0 : index
    %4 = vector.load %arg5[%c0_6, %c0_7] : memref<36x128xbf16, #tpu.memory_space<vmem>>, vector<36x128xbf16>
    %c0_8 = arith.constant 0 : index
    %c256 = arith.constant 256 : index
    %5 = vector.load %arg9[%c0_8, %c256] : memref<36x384xbf16, #tpu.memory_space<vmem>>, vector<36x128xbf16>
    tpu.vector_store %arg9[%c0_8, %c256], %4 {strides = array<i32>} : memref<36x384xbf16, #tpu.memory_space<vmem>>, vector<36x128xbf16>,
    %c0_9 = arith.constant 0 : index
    %c0_10 = arith.constant 0 : index
    %6 = vector.load %arg2[%c0_9, %c0_10] : memref<128x1xf32, #tpu.memory_space<vmem>>, vector<128x1xf32>
    %c0_11 = arith.constant 0 : index
    %c0_12 = arith.constant 0 : index
    %c0_13 = arith.constant 0 : index
    %7 = vector.load %arg1[%c0_11, %c0_12, %c0_13] : memref<9x128x36xbf16, #tpu.memory_space<vmem>>, vector<1x128x36xbf16>
    %8 = vector.shape_cast %7 : vector<1x128x36xbf16> to vector<128x36xbf16>
    %c0_14 = arith.constant 0 : index
    %c109 = arith.constant 109 : index
    %9 = vector.load %arg9[%c0_14, %c109] : memref<36x384xbf16, #tpu.memory_space<vmem>>, vector<36x128xbf16>
    %cst = arith.constant dense<0.000000e+00> : vector<128x128xf32>
    %10 = tpu.matmul %8, %9, %cst {dimension_numbers = #tpu.dot_dimension_numbers<[1], [0], [0], [1], [0, 0, 1, 1], [], []>} : vector<128x36xbf16>, vector<36x128xbf16>, vector<128x128xf32> -> vector<128x128xf32>
    %11 = vector.broadcast %6 : vector<128x1xf32> to vector<128x128xf32>
    %12 = arith.addf %11, %10 : vector<128x128xf32>
    %c1 = arith.constant 1 : index
    %c0_15 = arith.constant 0 : index
    %c0_16 = arith.constant 0 : index
    %13 = vector.load %arg1[%c1, %c0_15, %c0_16] : memref<9x128x36xbf16, #tpu.memory_space<vmem>>, vector<1x128x36xbf16>
    %14 = vector.shape_cast %13 : vector<1x128x36xbf16> to vector<128x36xbf16>
    %c0_17 = arith.constant 0 : index
    %c110 = arith.constant 110 : index
    %15 = vector.load %arg9[%c0_17, %c110] : memref<36x384xbf16, #tpu.memory_space<vmem>>, vector<36x128xbf16>
    %cst_18 = arith.constant dense<0.000000e+00> : vector<128x128xf32>
    %16 = tpu.matmul %14, %15, %cst_18 {dimension_numbers = #tpu.dot_dimension_numbers<[1], [0], [0], [1], [0, 0, 1, 1], [], []>} : vector<128x36xbf16>, vector<36x128xbf16>, vector<128x128xf32> -> vector<128x128xf32>
    %17 = arith.addf %12, %16 : vector<128x128xf32>
    %c2 = arith.constant 2 : index
    %c0_19 = arith.constant 0 : index
    %c0_20 = arith.constant 0 : index
    %18 = vector.load %arg1[%c2, %c0_19, %c0_20] : memref<9x128x36xbf16, #tpu.memory_space<vmem>>, vector<1x128x36xbf16>
    %19 = vector.shape_cast %18 : vector<1x128x36xbf16> to vector<128x36xbf16>
    %c0_21 = arith.constant 0 : index
    %c111 = arith.constant 111 : index
    %20 = vector.load %arg9[%c0_21, %c111] : memref<36x384xbf16, #tpu.memory_space<vmem>>, vector<36x128xbf16>
    %cst_22 = arith.constant dense<0.000000e+00> : vector<128x128xf32>
    %21 = tpu.matmul %19, %20, %cst_22 {dimension_numbers = #tpu.dot_dimension_numbers<[1], [0], [0], [1], [0, 0, 1, 1], [], []>} : vector<128x36xbf16>, vector<36x128xbf16>, vector<128x128xf32> -> vector<128x128xf32>
    %22 = arith.addf %17, %21 : vector<128x128xf32>
    %c3 = arith.constant 3 : index
    %c0_23 = arith.constant 0 : index
    %c0_24 = arith.constant 0 : index
    %23 = vector.load %arg1[%c3, %c0_23, %c0_24] : memref<9x128x36xbf16, #tpu.memory_space<vmem>>, vector<1x128x36xbf16>
    %24 = vector.shape_cast %23 : vector<1x128x36xbf16> to vector<128x36xbf16>
    %c0_25 = arith.constant 0 : index
    %c127 = arith.constant 127 : index
    %25 = vector.load %arg9[%c0_25, %c127] : memref<36x384xbf16, #tpu.memory_space<vmem>>, vector<36x128xbf16>
    %cst_26 = arith.constant dense<0.000000e+00> : vector<128x128xf32>
    %26 = tpu.matmul %24, %25, %cst_26 {dimension_numbers = #tpu.dot_dimension_numbers<[1], [0], [0], [1], [0, 0, 1, 1], [], []>} : vector<128x36xbf16>, vector<36x128xbf16>, vector<128x128xf32> -> vector<128x128xf32>
    %27 = arith.addf %22, %26 : vector<128x128xf32>
    %c4 = arith.constant 4 : index
    %c0_27 = arith.constant 0 : index
    %c0_28 = arith.constant 0 : index
    %28 = vector.load %arg1[%c4, %c0_27, %c0_28] : memref<9x128x36xbf16, #tpu.memory_space<vmem>>, vector<1x128x36xbf16>
    %29 = vector.shape_cast %28 : vector<1x128x36xbf16> to vector<128x36xbf16>
    %c0_29 = arith.constant 0 : index
    %c128_30 = arith.constant 128 : index
    %30 = vector.load %arg9[%c0_29, %c128_30] : memref<36x384xbf16, #tpu.memory_space<vmem>>, vector<36x128xbf16>
    %cst_31 = arith.constant dense<0.000000e+00> : vector<128x128xf32>
    %31 = tpu.matmul %29, %30, %cst_31 {dimension_numbers = #tpu.dot_dimension_numbers<[1], [0], [0], [1], [0, 0, 1, 1], [], []>} : vector<128x36xbf16>, vector<36x128xbf16>, vector<128x128xf32> -> vector<128x128xf32>
    %32 = arith.addf %27, %31 : vector<128x128xf32>
    %c5 = arith.constant 5 : index
    %c0_32 = arith.constant 0 : index
    %c0_33 = arith.constant 0 : index
    %33 = vector.load %arg1[%c5, %c0_32, %c0_33] : memref<9x128x36xbf16, #tpu.memory_space<vmem>>, vector<1x128x36xbf16>
    %34 = vector.shape_cast %33 : vector<1x128x36xbf16> to vector<128x36xbf16>
    %c0_34 = arith.constant 0 : index
    %c129 = arith.constant 129 : index
    %35 = vector.load %arg9[%c0_34, %c129] : memref<36x384xbf16, #tpu.memory_space<vmem>>, vector<36x128xbf16>
    %cst_35 = arith.constant dense<0.000000e+00> : vector<128x128xf32>
    %36 = tpu.matmul %34, %35, %cst_35 {dimension_numbers = #tpu.dot_dimension_numbers<[1], [0], [0], [1], [0, 0, 1, 1], [], []>} : vector<128x36xbf16>, vector<36x128xbf16>, vector<128x128xf32> -> vector<128x128xf32>
    %37 = arith.addf %32, %36 : vector<128x128xf32>
    %c6 = arith.constant 6 : index
    %c0_36 = arith.constant 0 : index
    %c0_37 = arith.constant 0 : index
    %38 = vector.load %arg1[%c6, %c0_36, %c0_37] : memref<9x128x36xbf16, #tpu.memory_space<vmem>>, vector<1x128x36xbf16>
    %39 = vector.shape_cast %38 : vector<1x128x36xbf16> to vector<128x36xbf16>
    %c0_38 = arith.constant 0 : index
    %c145 = arith.constant 145 : index
    %40 = vector.load %arg9[%c0_38, %c145] : memref<36x384xbf16, #tpu.memory_space<vmem>>, vector<36x128xbf16>
    %cst_39 = arith.constant dense<0.000000e+00> : vector<128x128xf32>
    %41 = tpu.matmul %39, %40, %cst_39 {dimension_numbers = #tpu.dot_dimension_numbers<[1], [0], [0], [1], [0, 0, 1, 1], [], []>} : vector<128x36xbf16>, vector<36x128xbf16>, vector<128x128xf32> -> vector<128x128xf32>
    %42 = arith.addf %37, %41 : vector<128x128xf32>
    %c7 = arith.constant 7 : index
    %c0_40 = arith.constant 0 : index
    %c0_41 = arith.constant 0 : index
    %43 = vector.load %arg1[%c7, %c0_40, %c0_41] : memref<9x128x36xbf16, #tpu.memory_space<vmem>>, vector<1x128x36xbf16>
    %44 = vector.shape_cast %43 : vector<1x128x36xbf16> to vector<128x36xbf16>
    %c0_42 = arith.constant 0 : index
    %c146 = arith.constant 146 : index
    %45 = vector.load %arg9[%c0_42, %c146] : memref<36x384xbf16, #tpu.memory_space<vmem>>, vector<36x128xbf16>
    %cst_43 = arith.constant dense<0.000000e+00> : vector<128x128xf32>
    %46 = tpu.matmul %44, %45, %cst_43 {dimension_numbers = #tpu.dot_dimension_numbers<[1], [0], [0], [1], [0, 0, 1, 1], [], []>} : vector<128x36xbf16>, vector<36x128xbf16>, vector<128x128xf32> -> vector<128x128xf32>
    %47 = arith.addf %42, %46 : vector<128x128xf32>
    %c8 = arith.constant 8 : index
    %c0_44 = arith.constant 0 : index
    %c0_45 = arith.constant 0 : index
    %48 = vector.load %arg1[%c8, %c0_44, %c0_45] : memref<9x128x36xbf16, #tpu.memory_space<vmem>>, vector<1x128x36xbf16>
    %49 = vector.shape_cast %48 : vector<1x128x36xbf16> to vector<128x36xbf16>
    %c0_46 = arith.constant 0 : index
    %c147 = arith.constant 147 : index
    %50 = vector.load %arg9[%c0_46, %c147] : memref<36x384xbf16, #tpu.memory_space<vmem>>, vector<36x128xbf16>
    %cst_47 = arith.constant dense<0.000000e+00> : vector<128x128xf32>
    %51 = tpu.matmul %49, %50, %cst_47 {dimension_numbers = #tpu.dot_dimension_numbers<[1], [0], [0], [1], [0, 0, 1, 1], [], []>} : vector<128x36xbf16>, vector<36x128xbf16>, vector<128x128xf32> -> vector<128x128xf32>
    %52 = arith.addf %47, %51 : vector<128x128xf32>
    %53 = vector.extract_strided_slice %52 {offsets = [0, 0], sizes = [32, 128], strides = [1, 1]} : vector<128x128xf32> to vector<32x128xf32>
    %cst_48 = arith.constant 5.000000e-01 : f32
    %54 = vector.broadcast %cst_48 : f32 to vector<32x128xf32>
    %55 = arith.mulf %54, %53 : vector<32x128xf32>
    %56 = math.tanh %55 : vector<32x128xf32>
    %cst_49 = arith.constant 1.000000e+00 : f32
    %57 = vector.broadcast %cst_49 : f32 to vector<32x128xf32>
    %58 = arith.addf %57, %56 : vector<32x128xf32>
    %cst_50 = arith.constant 5.000000e-01 : f32
    %59 = vector.broadcast %cst_50 : f32 to vector<32x128xf32>
    %60 = arith.mulf %59, %58 : vector<32x128xf32>
    %61 = vector.extract_strided_slice %52 {offsets = [32, 0], sizes = [32, 128], strides = [1, 1]} : vector<128x128xf32> to vector<32x128xf32>
    %cst_51 = arith.constant 5.000000e-01 : f32
    %62 = vector.broadcast %cst_51 : f32 to vector<32x128xf32>
    %63 = arith.mulf %62, %61 : vector<32x128xf32>
    %64 = math.tanh %63 : vector<32x128xf32>
    %cst_52 = arith.constant 1.000000e+00 : f32
    %65 = vector.broadcast %cst_52 : f32 to vector<32x128xf32>
    %66 = arith.addf %65, %64 : vector<32x128xf32>
    %cst_53 = arith.constant 5.000000e-01 : f32
    %67 = vector.broadcast %cst_53 : f32 to vector<32x128xf32>
    %68 = arith.mulf %67, %66 : vector<32x128xf32>
    %69 = vector.extract_strided_slice %52 {offsets = [64, 0], sizes = [32, 128], strides = [1, 1]} : vector<128x128xf32> to vector<32x128xf32>
    %70 = math.tanh %69 : vector<32x128xf32>
    %71 = vector.extract_strided_slice %52 {offsets = [96, 0], sizes = [32, 128], strides = [1, 1]} : vector<128x128xf32> to vector<32x128xf32>
    %cst_54 = arith.constant 5.000000e-01 : f32
    %72 = vector.broadcast %cst_54 : f32 to vector<32x128xf32>
    %73 = arith.mulf %72, %71 : vector<32x128xf32>
    %74 = math.tanh %73 : vector<32x128xf32>
    %cst_55 = arith.constant 1.000000e+00 : f32
    %75 = vector.broadcast %cst_55 : f32 to vector<32x128xf32>
    %76 = arith.addf %75, %74 : vector<32x128xf32>
    %cst_56 = arith.constant 5.000000e-01 : f32
    %77 = vector.broadcast %cst_56 : f32 to vector<32x128xf32>
    %78 = arith.mulf %77, %76 : vector<32x128xf32>
    %c0_57 = arith.constant 0 : index
    %c0_58 = arith.constant 0 : index
    %79 = vector.load %arg6[%c0_57, %c0_58] : memref<32x128xf32, #tpu.memory_space<vmem>>, vector<32x128xf32>
    %80 = arith.mulf %68, %79 : vector<32x128xf32>
    %81 = arith.mulf %60, %70 : vector<32x128xf32>
    %82 = arith.addf %80, %81 : vector<32x128xf32>
    %c0_59 = arith.constant 0 : index
    %c0_60 = arith.constant 0 : index
    %83 = vector.load %arg8[%c0_59, %c0_60] : memref<32x128xf32, #tpu.memory_space<vmem>>, vector<32x128xf32>
    tpu.vector_store %arg8[%c0_59, %c0_60], %82 {strides = array<i32>} : memref<32x128xf32, #tpu.memory_space<vmem>>, vector<32x128xf32>,
    %84 = math.tanh %82 : vector<32x128xf32>
    %85 = arith.mulf %78, %84 : vector<32x128xf32>
    %c0_61 = arith.constant 0 : index
    %c0_62 = arith.constant 0 : index
    %86 = vector.load %arg7[%c0_61, %c0_62] : memref<32x128xf32, #tpu.memory_space<vmem>>, vector<32x128xf32>
    tpu.vector_store %arg7[%c0_61, %c0_62], %85 {strides = array<i32>} : memref<32x128xf32, #tpu.memory_space<vmem>>, vector<32x128xf32>,
    return
  }
  func.func @transform_0(%arg0: i32) -> (i32, i32, i32) {
    %c0_i32 = arith.constant 0 : i32
    %c0_i32_0 = arith.constant 0 : i32
    %c0_i32_1 = arith.constant 0 : i32
    %c0_i32_2 = arith.constant 0 : i32
    return %c0_i32, %c0_i32_0, %c0_i32_1 : i32, i32, i32
  }
  func.func @transform_1(%arg0: i32) -> (i32, i32) {
    %c0_i32 = arith.constant 0 : i32
    %c0_i32_0 = arith.constant 0 : i32
    %c0_i32_1 = arith.constant 0 : i32
    return %c0_i32, %c0_i32_0 : i32, i32
  }
  func.func @transform_2(%arg0: i32) -> (i32, i32) {
    %c0_i32 = arith.constant 0 : i32
    %c0_i32_0 = arith.constant 0 : i32
    return %c0_i32, %arg0 : i32, i32
  }
  func.func @transform_3(%arg0: i32) -> (i32, i32) {
    %c1_i32 = arith.constant 1 : i32
    %0 = arith.addi %arg0, %c1_i32 : i32
    %c0_i32 = arith.constant 0 : i32
    %c0_i32_0 = arith.constant 0 : i32
    return %c0_i32, %0 : i32, i32
  }
  func.func @transform_4(%arg0: i32) -> (i32, i32) {
    %c2_i32 = arith.constant 2 : i32
    %0 = arith.addi %arg0, %c2_i32 : i32
    %c0_i32 = arith.constant 0 : i32
    %c0_i32_0 = arith.constant 0 : i32
    return %c0_i32, %0 : i32, i32
  }
  func.func @transform_5(%arg0: i32) -> (i32, i32) {
    %c0_i32 = arith.constant 0 : i32
    %c0_i32_0 = arith.constant 0 : i32
    return %c0_i32, %arg0 : i32, i32
  }
  func.func @transform_6(%arg0: i32) -> (i32, i32) {
    %c0_i32 = arith.constant 0 : i32
    %c0_i32_0 = arith.constant 0 : i32
    return %c0_i32, %arg0 : i32, i32
  }
  func.func @transform_7(%arg0: i32) -> (i32, i32) {
    %c0_i32 = arith.constant 0 : i32
    %c0_i32_0 = arith.constant 0 : i32
    return %c0_i32, %arg0 : i32, i32
  }
}

</mosaic_0001>

<bundles_post_ra>
// kernel: tpu_custom_call.1
= control target key start
LH: loop header
LB: loop body
LE: loop exit
PB: predicated region body
PF: predicated region fallthrough
CT: control target
= control target key end

     0   :  { %s4841_s0 = inlined_call_operand.vmem [shape: bf16[9,128,36], index: 0, kind: input, shape index: {}]   ;;  %s4842_s1 = inlined_call_operand.vmem [shape: f32[128,1], index: 1, kind: input, shape index: {}]   ;;  %s4843_s2 = inlined_call_operand.vmem [shape: bf16[36,1024], index: 2, kind: input, shape index: {}]   ;;  %s4844_s3 = inlined_call_operand.vmem [shape: bf16[36,1024], index: 3, kind: input, shape index: {}]   ;;  %s4845_s4 = inlined_call_operand.vmem [shape: bf16[36,1024], index: 4, kind: input, shape index: {}]   ;;  %s4846_s5 = inlined_call_operand.vmem [shape: f32[32,768], index: 5, kind: input, shape index: {}]   ;;  %s4847_s6 = inlined_call_operand.hbm [shape: f32[32,768], index: 6, kind: output, shape index: {0}]   ;;  %s4848_s7 = inlined_call_operand.hbm [shape: f32[32,768], index: 7, kind: output, shape index: {1}]  }
   0x1   :  { %4851 = sst [smem:[#allocation15_spill]] %s4843_s2 }
   0x2   :  { %13 = vsyncpa [#allocation8], 0 }
   0x3   :  { %15 = vsyncpa [#allocation8 + $0x1], 0 }
   0x4   :  { %16 = vsyncpa [#allocation10], 0 }
   0x5   :  { %18 = vsyncpa [#allocation10 + $0x1], 0  ;;  %s4144_s24 = smov 0   ;;  %s4146_s25 = smov 0  }
   0x6   :  { %s4148_s26 = smov 0   ;;  %s4150_s27 = smov 0  }
   0x7   :  { %s4152_s28 = smov 0   ;;  %s4154_s29 = smov 0  }
   0x8   :  { %s4156_s30 = smov 0   ;;  %s4158_s8 = smov 0  }
   0x9 LB: > { %s4849_s9 = sadd.s32 4294967295, %s4088_s8   ;;  %s2963_s10 = sadd.s32 4294967294, %s4088_s8   ;;  %s4088_s8 = sphi %s4158_s8, %s4872_s8   ;;  %s4084_s30 = sphi %s4156_s30, %s4871_s30   ;;  %s4080_s29 = sphi %s4154_s29, %s4870_s29   ;;  %s4076_s28 = sphi %s4152_s28, %s4869_s28   ;;  %s4072_s27 = sphi %s4150_s27, %s4868_s27   ;;  %s4068_s26 = sphi %s4148_s26, %s4867_s26   ;;  %s4064_s25 = sphi %s4146_s25, %s4866_s25   ;;  %s4060_s24 = sphi %s4144_s24, %s4865_s24  }
   0xa   : > { %s4187_s11 = sadd.s32 1, %s4088_s8   ;;  %s73_s12 = sadd.s32 1, %s4084_s30 }
   0xb   : > { %s70_s13 = ssub.s32 %s4088_s8, %s4187_s11  ;;  %p80_p0 = scmp.ne.s32.totalorder %s4084_s30, %s4080_s29 }
   0xc   : > { %p71_p1 = scmp.eq.s32.totalorder %s70_s13, 0  ;;  %p81_p2 = scmp.eq.s32.totalorder %s4088_s8, 0 }
   0xd   : > { %s97_s14 = sadd.s32 1, %s4187_s11  ;;  %s101_s15 = sadd.s32 1, %s4076_s28 }
   0xe   : > { %s4198_s16 = scalar_select %p71_p1, %s4084_s30, %s73_s12  }
   0xf   : > { %p4205_p3 = por %p81_p2, %p80_p0  ;;  %s98_s18 = ssub.s32 %s4187_s11, %s97_s14 }
  0x10   : > { %4852 = sst [smem:[#allocation13_spill]] %s4198_s16  ;;  %p99_p4 = scmp.eq.s32.totalorder %s98_s18, 0 }
  0x11   : > { %p108_p5 = scmp.ne.s32.totalorder %s4076_s28, %s4072_s27  ;;  %s124_s19 = sadd.s32 2, %s4088_s8 }
  0x12   : > { %s125_s20 = sadd.s32 2, %s4187_s11  ;;  %s129_s12 = sadd.s32 1, %s4068_s26 }
  0x13   : > { %s4215_s21 = scalar_select %p99_p4, %s4076_s28, %s101_s15  }
  0x14   : > { %p4219_p6 = por %p108_p5, %p81_p2  ;;  %s126_s23 = ssub.s32 %s124_s19, %s125_s20 }
  0x15   : > { %4854 = sst [smem:[#allocation14_spill]] %s4215_s21  ;;  %p127_p7 = scmp.eq.s32.totalorder %s126_s23, 0 }
  0x16   : > { %p136_p8 = scmp.ne.s32.totalorder %s4068_s26, %s4064_s25  ;;  %p192_p9 = scmp.eq.s32.totalorder %s4849_s9, 5 }
  0x17   : > { %s4229_s13 = scalar_select %p127_p7, %s4068_s26, %s129_s12  }
  0x18   : > { %p4233_p10 = por %p136_p8, %p81_p2  ;;  %p4240_p11 = por %p192_p9, %p80_p0 }
  0x19   : > { %p197_p12 = scmp.ne.s32.totalorder %s4080_s29, %s4060_s24  ;;  %p198_p13 = scmp.eq.s32.totalorder %s2963_s10, 5 }
  0x1a   : > { %p2965_p4 = scmp.ge.s32.totalorder %s4088_s8, 6 }
  0x1b   : > { %p4246_p1 = por %p198_p13, %p197_p12 }
  0x1c   : > { %246 = sbr.rel (%p2965_p4) target bundleno = 75 (0x4b), region = 24 }
  0x23   : > { %249 = sbr.rel (!%p4205_p3) target bundleno = 50 (0x32), region = 28  ;;  %s251_s19 = sand.u32 (%p4205_p3), 1, %s4084_s30  }
  0x24   : > { %s2966_s20 = sshll.u32 (%p4205_p3), %s4088_s8, 2  ;;  %s3735_s23 = smul.u32 (%p4205_p3), 20, %s251_s19 }
  0x25   : > { %s4859_s2 = sld [smem:[#allocation15_spill]] (%p4205_p3) }
  0x26   : > { %s253_s10 = scalar_lea.vmem (%p4205_p3), [#allocation3], %s3735_s23 }
  0x2b   : > { %s255_s16 = scalar_lea.vmem %s4859_s2, %s2966_s20 }
  0x2c   : > { %v271_v0 = vld [vmem:[%s255_s16] sm:$0xf] }
  0x2d   : > { %v273_v1 = vld [vmem:[%s255_s16 + $0x20] sm:$0xf]  ;;  %272 = vst [vmem:[%s253_s10] sm:$0xf] %v271_v0 }
  0x2e   : > { %v275_v2 = vld [vmem:[%s255_s16 + $0x40] sm:$0xf]  ;;  %274 = vst [vmem:[%s253_s10 + $0x4] sm:$0xf] %v273_v1 }
  0x2f   : > { %v277_v3 = vld [vmem:[%s255_s16 + $0x60] sm:$0xf]  ;;  %276 = vst [vmem:[%s253_s10 + $0x8] sm:$0xf] %v275_v2 }
  0x30   : > { %v279_v4 = vld [vmem:[%s255_s16 + $0x80] sm:$0xf]  ;;  %278 = vst [vmem:[%s253_s10 + $0xc] sm:$0xf] %v277_v3 }
  0x31   : > { %280 = vst [vmem:[%s253_s10 + $0x10] sm:$0xf] %v279_v4 }
  0x32 PF: > { %313 = sbr.rel (!%p4219_p6) target bundleno = 59 (0x3b), region = 69  ;;  %s315_s19 = sand.u32 (%p4219_p6), 1, %s4076_s28  }
  0x33   : > { %s2967_s9 = sshll.u32 (%p4219_p6), %s4088_s8, 2  ;;  %s3736_s20 = smul.u32 (%p4219_p6), 20, %s315_s19 }
  0x34   : > { %s2850_s21 = scalar_lea.vmem (%p4219_p6), %s4844_s3, %s2967_s9 }
  0x35   : > { %v2968_v5 = vld [vmem:[%s2850_s21 + $0x4] sm:$0xf] (%p4219_p6)  ;;  %s317_s16 = scalar_lea.vmem (%p4219_p6), [#allocation4], %s3736_s20 }
  0x36   : > { %v2969_v6 = vld [vmem:[%s2850_s21 + $0x24] sm:$0xf] (%p4219_p6)  ;;  %337 = vst [vmem:[%s317_s16] sm:$0xf] (%p4219_p6), %v2968_v5 }
  0x37   : > { %v2970_v7 = vld [vmem:[%s2850_s21 + $0x44] sm:$0xf] (%p4219_p6)  ;;  %339 = vst [vmem:[%s317_s16 + $0x4] sm:$0xf] (%p4219_p6), %v2969_v6 }
  0x38   : > { %v2971_v8 = vld [vmem:[%s2850_s21 + $0x64] sm:$0xf] (%p4219_p6)  ;;  %341 = vst [vmem:[%s317_s16 + $0x8] sm:$0xf] (%p4219_p6), %v2970_v7 }
  0x39   : > { %v2972_v9 = vld [vmem:[%s2850_s21 + $0x84] sm:$0xf]  ;;  %343 = vst [vmem:[%s317_s16 + $0xc] sm:$0xf] %v2971_v8 }
  0x3a   : > { %345 = vst [vmem:[%s317_s16 + $0x10] sm:$0xf] %v2972_v9 }
  0x3b PF: > { %378 = sbr.rel (!%p4233_p10) target bundleno = 68 (0x44), region = 110  ;;  %s380_s22 = sand.u32 (%p4233_p10), 1, %s4068_s26  }
  0x3c   : > { %s2973_s2 = sshll.u32 (%p4233_p10), %s4088_s8, 2  ;;  %s3737_s23 = smul.u32 (%p4233_p10), 20, %s380_s22 }
  0x3d   : > { %s2855_s9 = scalar_lea.vmem (%p4233_p10), %s4845_s4, %s2973_s2 }
  0x3e   : > { %v2974_v10 = vld [vmem:[%s2855_s9 + $0x8] sm:$0xf] (%p4233_p10)  ;;  %s382_s21 = scalar_lea.vmem (%p4233_p10), [#allocation5], %s3737_s23 }
  0x3f   : > { %v2975_v11 = vld [vmem:[%s2855_s9 + $0x28] sm:$0xf] (%p4233_p10)  ;;  %402 = vst [vmem:[%s382_s21] sm:$0xf] (%p4233_p10), %v2974_v10 }
  0x40   : > { %v2976_v12 = vld [vmem:[%s2855_s9 + $0x48] sm:$0xf] (%p4233_p10)  ;;  %404 = vst [vmem:[%s382_s21 + $0x4] sm:$0xf] (%p4233_p10), %v2975_v11 }
  0x41   : > { %v2977_v13 = vld [vmem:[%s2855_s9 + $0x68] sm:$0xf] (%p4233_p10)  ;;  %406 = vst [vmem:[%s382_s21 + $0x8] sm:$0xf] (%p4233_p10), %v2976_v12 }
  0x42   : > { %v2978_v14 = vld [vmem:[%s2855_s9 + $0x88] sm:$0xf]  ;;  %408 = vst [vmem:[%s382_s21 + $0xc] sm:$0xf] %v2977_v13 }
  0x43   : > { %410 = vst [vmem:[%s382_s21 + $0x10] sm:$0xf] %v2978_v14 }
  0x44 PF: > { %443 = sbr.rel (!%p4205_p3) target bundleno = 75 (0x4b), region = 151  ;;  %s445_s14 = sand.u32 (%p4205_p3), 1, %s4084_s30  }
  0x45   : > { %s2980_s20 = sshll.u32 (%p4205_p3), %s4088_s8, 3  ;;  %s2979_s12 = sshll.u32 (%p4205_p3), %s445_s14, 5 }
  0x46   : > { %s449_s2 = scalar_lea.vmem (%p4205_p3), %s4846_s5, %s2980_s20  ;;  %s447_s23 = scalar_lea.vmem (%p4205_p3), [#allocation6], %s2979_s12 }
  0x47   : > { %v483_v15 = vld [vmem:[%s449_s2] sm:$0xff] (%p4205_p3)  ;;  %v485_v16 = vld [vmem:[%s449_s2 + $0x30] sm:$0xff] (%p4205_p3) }
  0x48   : > { %v487_v17 = vld [vmem:[%s449_s2 + $0x60] sm:$0xff] (%p4205_p3)  ;;  %484 = vst [vmem:[%s447_s23] sm:$0xff] (%p4205_p3), %v483_v15  ;;  %486 = vst [vmem:[%s447_s23 + $0x8] sm:$0xff] (%p4205_p3), %v485_v16  ;;  %v489_v18 = vld [vmem:[%s449_s2 + $0x90] sm:$0xff] (%p4205_p3) }
  0x49   : > { %488 = vst [vmem:[%s447_s23 + $0x10] sm:$0xff] (%p4205_p3), %v487_v17  ;;  %490 = vst [vmem:[%s447_s23 + $0x18] sm:$0xff] (%p4205_p3), %v489_v18 }
  0x4b PF: > { %p2981_p0 = scmp.ge.s32.totalorder %s4088_s8, 1  ;;  %p495_p2 = scmp.lt.s32.totalorder %s4088_s8, 7 }
  0x4d   : > { %p496_p3 = pnand %p2981_p0, %p495_p2 }
  0x4e   : > { %s4282_s17 = sand.u32 (!%p496_p3), 1, %s4080_s29   ;;  %s509_s10 = sand.u32 (!%p496_p3), 1, %s4072_s27   ;;  %vm720_vm0 = vcmask (!%p496_p3), 293888   ;;  %v3850_v34 = vld [vmem:[%s4841_s0 + $0x100] sm:$0xff] (!%p496_p3)   ;;  %vm745_vm1 = vcmask (!%p496_p3), 1041408   ;;  %v3851_v52 = vld [vmem:[%s4841_s0 + $0x108] sm:$0xff] (!%p496_p3)  }
  0x4f   : > { %499 = sbr.rel (%p496_p3) target bundleno = 630 (0x276), region = 189  ;;  %s516_s21 = sand.u32 (!%p496_p3), 1, %s4064_s25   ;;  %3471 = vmatprep.mubr.msk.bf16.mxu0 (!%p496_p3), %vm720_vm0, %v3850_v34  ;;  %v3852_v44 = vld [vmem:[%s4841_s0] sm:$0xff] (!%p496_p3)   ;;  %v3853_v53 = vld [vmem:[%s4841_s0 + $0x110] sm:$0xff] (!%p496_p3)   ;;  %v3855_v56 = vld [vmem:[%s4841_s0 + $0x118] sm:$0xff] (!%p496_p3)   ;;  %vm714_vm2 = vcmask (!%p496_p3), 154624  }
  0x50   : > { %s3738_s19 = smul.u32 (!%p496_p3), 20, %s4282_s17  ;;  %s4090_s22 = smov (!%p496_p3), 19   ;;  %3383 = vmatprep.mubr.msk.bf16.mxu1 (!%p496_p3), %vm720_vm0, %v3852_v44  ;;  %v3857_v57 = vld [vmem:[%s4841_s0 + $0x140] sm:$0xff] (!%p496_p3)   ;;  %vm1899_vm3 = vcmask (!%p496_p3), 1039360   ;;  %v3854_v7 = vld [vmem:[%s4841_s0 + $0x8] sm:$0xff] (!%p496_p3)   ;;  %v3856_v9 = vld [vmem:[%s4841_s0 + $0x10] sm:$0xff] (!%p496_p3)  }
  0x51   : > { %s3739_s9 = smul.u32 (!%p496_p3), 20, %s509_s10  ;;  %s4091_s10 = smov (!%p496_p3), 127   ;;  %v3858_v16 = vld [vmem:[%s4841_s0 + $0x18] sm:$0xff] (!%p496_p3)   ;;  %vm1011_vm4 = vcmask (!%p496_p3), 146432   ;;  %v3859_v18 = vld [vmem:[%s4841_s0 + $0x148] sm:$0xff] (!%p496_p3)   ;;  %v3865_v34 = vld [vmem:[%s4841_s0 + $0x160] sm:$0xff] (!%p496_p3)  }
  0x52   : > { %s3740_s14 = smul.u32 (!%p496_p3), 20, %s516_s21  ;;  %s504_s20 = scalar_lea.vmem (!%p496_p3), [#allocation3], %s3738_s19  ;;  %vm2114_vm5 = vcmask (!%p496_p3), 908288   ;;  %v3866_v44 = vld [vmem:[%s4841_s0 + $0x38] sm:$0xff] (!%p496_p3)   ;;  %vm1226_vm6 = vcmask (!%p496_p3), 138240   ;;  %vm2329_vm7 = vcmask (!%p496_p3), 900096  }
  0x53   : > { %v576_v19 = vld [vmem:[%s504_s20 + $0x8] sm:$0xf] (!%p496_p3)  ;;  %v577_v20 = vld [vmem:[%s504_s20 + $0xc] sm:$0xf] (!%p496_p3)  ;;  %s511_s12 = scalar_lea.vmem (!%p496_p3), [#allocation4], %s3739_s9  ;;  %s4092_s16 = smov (!%p496_p3), 18  }
  0x54   : > { %581 = vst [vmem:[#allocation2 + $0x18] sm:$0xf] (!%p496_p3), %v576_v19  ;;  %582 = vst [vmem:[#allocation2 + $0x24] sm:$0xf] (!%p496_p3), %v577_v20  ;;  %v586_v21 = vld [vmem:[%s511_s12 + $0x8] sm:$0xf] (!%p496_p3) }
  0x55   : > { %v587_v22 = vld [vmem:[%s511_s12 + $0xc] sm:$0xf] (!%p496_p3)  ;;  %v574_v23 = vld [vmem:[%s504_s20] sm:$0xf] (!%p496_p3)  ;;  %591 = vst [vmem:[#allocation2 + $0x1c] sm:$0xf] (!%p496_p3), %v586_v21 }
  0x56   : > { %592 = vst [vmem:[#allocation2 + $0x28] sm:$0xf] %v587_v22  ;;  %v575_v24 = vld [vmem:[%s504_s20 + $0x4] sm:$0xf]  ;;  %579 = vst [vmem:[#allocation2] sm:$0xf] %v574_v23 }
  0x57   : > { %v584_v25 = vld [vmem:[%s511_s12] sm:$0xf]  ;;  %v585_v26 = vld [vmem:[%s511_s12 + $0x4] sm:$0xf]  ;;  %580 = vst [vmem:[#allocation2 + $0xc] sm:$0xf] %v575_v24 }
  0x58   : > { %589 = vst [vmem:[#allocation2 + $0x4] sm:$0xf] %v584_v25  ;;  %590 = vst [vmem:[#allocation2 + $0x10] sm:$0xf] %v585_v26  ;;  %v578_v27 = vld [vmem:[%s504_s20 + $0x10] sm:$0x3] }
  0x59   : > { %v588_v28 = vld [vmem:[%s511_s12 + $0x10] sm:$0x3]  ;;  %583 = vst [vmem:[#allocation2 + $0x30] sm:$0x3] %v578_v27  ;;  %s518_s25 = scalar_lea.vmem [#allocation5], %s3740_s14  ;;  %s4094_s2 = smov 17  }
  0x5a   : > { %593 = vst [vmem:[#allocation2 + $0x34] sm:$0x3] %v588_v28  ;;  %v594_v29 = vld [vmem:[%s518_s25] sm:$0xf]  ;;  %v595_v30 = vld [vmem:[%s518_s25 + $0x4] sm:$0xf] }
  0x5b   : > { %v596_v31 = vld [vmem:[%s518_s25 + $0x8] sm:$0xf]  ;;  %599 = vst [vmem:[#allocation2 + $0x8] sm:$0xf] %v594_v29  ;;  %600 = vst [vmem:[#allocation2 + $0x14] sm:$0xf] %v595_v30 }
  0x5c   : > { %v597_v32 = vld [vmem:[%s518_s25 + $0xc] sm:$0xf]  ;;  %601 = vst [vmem:[#allocation2 + $0x20] sm:$0xf] %v596_v31  ;;  %v598_v33 = vld [vmem:[%s518_s25 + $0x10] sm:$0x3] }
  0x5d   : > { %602 = vst [vmem:[#allocation2 + $0x2c] sm:$0xf] %v597_v32  ;;  %603 = vst [vmem:[#allocation2 + $0x38] sm:$0x3] %v598_v33  ;;  %v4291_v35 = vld [vmem:[#allocation2 + $0x18] ss:$12 sps:$4 sm:$0xff]  }
  0x5e   : > { %v4293_v36 = vld [vmem:[#allocation2] ss:$12 sps:$4 sm:$0xff]   ;;  %706 = vrot.lane.b32.xlu1 %v4291_v35, %s4090_s22  ;;  %v4296_v37 = vld [vmem:[#allocation2 + $0x1c] ss:$12 sps:$4 sm:$0xff]   ;;  %s4095_s23 = smov 110   ;;  %s4097_s19 = smov 109  }
  0x5f   : > { %v4298_v38 = vld [vmem:[#allocation2 + $0x4] ss:$12 sps:$4 sm:$0xff]   ;;  %702 = vrot.lane.b32.xlu0 %v4293_v36, %s4090_s22  ;;  %v4309_v43 = vld [vmem:[#allocation2 + $0x1c] ss:$12 sps:$4 sm:$0xff]   ;;  %v4098_v28 = vmov 0   ;;  %vm1441_vm8 = vcmask 7168  }
  0x60   : > { %v4304_v41 = vld [vmem:[#allocation2 + $0x4] ss:$12 sps:$4 sm:$0xff]   ;;  %v3844_v49 = vld [vmem:[#allocation2 + $0x1c] ss:$12 sps:$4 sm:$0xff]   ;;  %3830 = vset.pattern.permute.xlu1 %v4098_v28  ;;  %3829 = vset.pattern.permute.xlu0 %v4098_v28  ;;  %vm2544_vm9 = vcmask 891904   ;;  %s4099_s27 = smov [#allocation9]  }
  0x61   : > { %v640_v39 = vld [vmem:[#allocation2 + $0x30] sm:$0x33]  ;;  %3465 = vmatprep.subr.bf16.mxu0 %v4304_v41  ;;  %v3860_v20 = vld [vmem:[%s4841_s0 + $0x20] sm:$0xff]   ;;  %v605_v24 = vld [vmem:[%s4842_s1 + $0x8] sm:$0xff] }
  0x62   : > { %708 = vrot.lane.b32.xlu1 %v4296_v37, %s4090_s22  ;;  %v4302_v40 = vcombine.high %v640_v39, %v640_v39  ;;  %v4307_v42 = vcombine.low %v640_v39, %v640_v39  ;;  %v4315_v45 = vld [vmem:[#allocation2 + $0x8] ss:$12 sps:$4 sm:$0xff]   ;;  %3466 = vmatpush3.bf16.msra.mxu0 %v4304_v41  ;;  %v4321_v47 = vld [vmem:[#allocation2 + $0x4] ss:$12 sps:$4 sm:$0xff]   ;;  %v3863_v30 = vld [vmem:[%s4841_s0 + $0x158] sm:$0xff]  }
  0x63   : > { %704 = vrot.lane.b32.xlu0 %v4298_v38, %s4090_s22  ;;  %v4318_v46 = vld [vmem:[#allocation2 + $0x34] ss:$0 sps:$4 sm:$0x33]   ;;  %3467 = vmatprep.subr.bf16.mxu0 %v4309_v43  ;;  %v604_v26 = vld [vmem:[%s4842_s1] sm:$0xff]  ;;  %v3862_v29 = vld [vmem:[%s4841_s0 + $0x28] sm:$0xff]  }
  0x64   : > { %v3842_v48 = vld [vmem:[#allocation2 + $0x20] ss:$12 sps:$4 sm:$0xff]   ;;  %v4329_v50 = vsel %vm745_vm1, %v4318_v46, 0  ;;  %v1825_v51 = vld [vmem:[#allocation2 + $0x34] sm:$0x33] }
  0x65   : > { %v3167_v54 = vcombine.high %v1825_v51, %v1825_v51  ;;  %v3166_v55 = vcombine.low %v1825_v51, %v1825_v51  ;;  %v3861_v21 = vld [vmem:[%s4841_s0 + $0x150] sm:$0xff]   ;;  %v3868_v51 = vld [vmem:[%s4841_s0 + $0x40] sm:$0xff]  }
  0x66   : > { %712 = vrot.lane.b32.xlu1 %v4302_v40, %s4090_s22  ;;  %3468 = vmatpush3.bf16.msra.mxu0 %v4309_v43  ;;  %v3864_v32 = vld [vmem:[%s4841_s0 + $0x30] sm:$0xff]  }
  0x67   : > { %710 = vrot.lane.b32.xlu0 %v4307_v42, %s4090_s22  ;;  %3729 = vmatprep.subr.msk.bf16.mxu0 %vm745_vm1, %v4318_v46  ;;  %s4093_s22 = smov 111   ;;  %v3880_v28 = vld [vmem:[%s4841_s0 + $0x70] sm:$0xff]  }
  0x6a   : > { %1889 = vrot.lane.b32.xlu1 %v4315_v45, %s4091_s10  ;;  %3470 = vmatpush3.bf16.msra.mxu0 %v4329_v50 }
  0x6b   : > { %1887 = vrot.lane.b32.xlu0 %v4321_v47, %s4091_s10 }
  0x6d   : > { %3472 = vmatmul.mubr.msk.bf16.vlgmr.msra.gmra.mrb[0].mxu0 %vm720_vm0, %v3851_v52 }
  0x6e   : > { %1893 = vrot.lane.b32.xlu1 %v3842_v48, %s4091_s10  ;;  %3475 = vmatprep.mubr.msk.bf16.mxu0 %vm720_vm0, %v3853_v53  ;;  %v3869_v53 = vld [vmem:[%s4841_s0 + $0x170] sm:$0xff]  }
  0x6f   : > { %1891 = vrot.lane.b32.xlu0 %v3844_v49, %s4091_s10 }
  0x72   : > { %1897 = vrot.lane.b32.xlu1 %v3167_v54, %s4091_s10 }
  0x73   : > { %1895 = vrot.lane.b32.xlu0 %v3166_v55, %s4091_s10  ;;  %s4096_s10 = smov 1  }
  0x75   : > { %3476 = vmatmul.mubr.msk.bf16.gmra.mrb[4].mxu0 %vm720_vm0, %v3855_v56  ;;  %v611_v56 = vld [vmem:[%s4842_s1 + $0x38] sm:$0xff] }
  0x76   : > { %1001 = vrot.lane.b32.xlu1 %v4298_v38, %s4092_s16  ;;  %3493 = vmatprep.mubr.msk.bf16.mxu0 %vm720_vm0, %v3857_v57 }
  0x77   : > { %999 = vrot.lane.b32.xlu0 %v4293_v36, %s4092_s16 }
  0x7a   : > { %1005 = vrot.lane.b32.xlu1 %v4296_v37, %s4092_s16 }
  0x7b   : > { %1003 = vrot.lane.b32.xlu0 %v4291_v35, %s4092_s16 }
  0x7e   : > { %1009 = vrot.lane.b32.xlu1 %v4302_v40, %s4092_s16 }
  0x7f   : > { %1007 = vrot.lane.b32.xlu0 %v4307_v42, %s4092_s16  ;;  %s3966_s16 = sshll.u32 %s4099_s27, 4  ;;  %s3967_s16 = int_to_ptr.vmem [resolvable:$false] %s3966_s16 }
  0x82   : > { %2104 = vrot.lane.b32.xlu1 %v4315_v45, %s4093_s22 }
  0x83   : > { %2102 = vrot.lane.b32.xlu0 %v4321_v47, %s4093_s22 }
  0x86   : > { %2108 = vrot.lane.b32.xlu1 %v3842_v48, %s4093_s22 }
  0x87   : > { %2106 = vrot.lane.b32.xlu0 %v3844_v49, %s4093_s22 }
  0x8a   : > { %2112 = vrot.lane.b32.xlu1 %v3167_v54, %s4093_s22 }
  0x8b   : > { %2110 = vrot.lane.b32.xlu0 %v3166_v55, %s4093_s22  ;;  %s4733_s22 = sshll.u32 %s4282_s17, 5 }
  0x8e   : > { %1216 = vrot.lane.b32.xlu1 %v4298_v38, %s4094_s2 }
  0x8f   : > { %1214 = vrot.lane.b32.xlu0 %v4293_v36, %s4094_s2 }
  0x92   : > { %1220 = vrot.lane.b32.xlu1 %v4296_v37, %s4094_s2 }
  0x93   : > { %1218 = vrot.lane.b32.xlu0 %v4291_v35, %s4094_s2 }
  0x96   : > { %1224 = vrot.lane.b32.xlu1 %v4302_v40, %s4094_s2 }
  0x97   : > { %1222 = vrot.lane.b32.xlu0 %v4307_v42, %s4094_s2  ;;  %s525_s2 = scalar_lea.vmem [#allocation6], %s4733_s22 }
  0x9a   : > { %2319 = vrot.lane.b32.xlu1 %v4315_v45, %s4095_s23 }
  0x9b   : > { %2317 = vrot.lane.b32.xlu0 %v4321_v47, %s4095_s23 }
  0x9e   : > { %2323 = vrot.lane.b32.xlu1 %v3842_v48, %s4095_s23 }
  0x9f   : > { %2321 = vrot.lane.b32.xlu0 %v3844_v49, %s4095_s23 }
  0xa2   : > { %2327 = vrot.lane.b32.xlu1 %v3167_v54, %s4095_s23 }
  0xa3   : > { %2325 = vrot.lane.b32.xlu0 %v3166_v55, %s4095_s23  ;;  %s570_s23 = scalar_lea.vmem [#allocation9], %s4733_s22 }
  0xa6   : > { %1431 = vrot.lane.b32.xlu1 %v4298_v38, %s4096_s10  ;;  %v607_v38 = vld [vmem:[%s4842_s1 + $0x18] sm:$0xff] }
  0xa7   : > { %1429 = vrot.lane.b32.xlu0 %v4293_v36, %s4096_s10 }
  0xaa   : > { %1435 = vrot.lane.b32.xlu1 %v4296_v37, %s4096_s10  ;;  %v606_v37 = vld [vmem:[%s4842_s1 + $0x10] sm:$0xff] }
  0xab   : > { %1433 = vrot.lane.b32.xlu0 %v4291_v35, %s4096_s10 }
  0xae   : > { %1439 = vrot.lane.b32.xlu1 %v4302_v40, %s4096_s10 }
  0xaf   : > { %1437 = vrot.lane.b32.xlu0 %v4307_v42, %s4096_s10  ;;  %s2807_s10 = sshll.u32 %s570_s23, 4  ;;  %s4741_s10 = int_to_ptr.vmem [resolvable:$true] %s2807_s10 }
  0xb0   : > { %s3962_s25 = scalar_lea.vmem %s4741_s10, 512  ;;  %p3969_p8 = scmp.lt.s32.totalorder %s4741_s10, %s3967_s16 }
  0xb1   : > { %p3963_p5 = scmp.ne.s32.totalorder %s4741_s10, %s3962_s25 }
  0xb2   : > { %2534 = vrot.lane.b32.xlu1 %v4315_v45, %s4097_s19  ;;  %v608_v45 = vld [vmem:[%s4842_s1 + $0x20] sm:$0xff] }
  0xb3   : > { %2532 = vrot.lane.b32.xlu0 %v4321_v47, %s4097_s19  ;;  %v609_v47 = vld [vmem:[%s4842_s1 + $0x28] sm:$0xff]  ;;  %p3964_p6 = pnand %p3963_p5, %p4240_p11 }
  0xb5   : > { %p3965_p7 = pneg %p3964_p6 }
  0xb6   : > { %2538 = vrot.lane.b32.xlu1 %v3842_v48, %s4097_s19  ;;  %v3867_v48 = vld [vmem:[%s4841_s0 + $0x168] sm:$0xff]  }
  0xb7   : > { %2536 = vrot.lane.b32.xlu0 %v3844_v49, %s4097_s19 }
  0xba   : > { %2542 = vrot.lane.b32.xlu1 %v3167_v54, %s4097_s19 }
  0xbb   : > { %2540 = vrot.lane.b32.xlu0 %v3166_v55, %s4097_s19  ;;  %v610_v55 = vld [vmem:[%s4842_s1 + $0x30] sm:$0xff]  ;;  %s4860_s19 = sadd.s32 4294967295, %s4088_s8  }
  0xbc   : > { %s4739_s9 = sshll.u32 %s4860_s19, 7 }
  0xbd   : > { %s4747_s20 = scalar_lea.hbm %s4848_s7, %s4739_s9 }
  0xbe   : > { %853 = vperm.xlu1 %3830, %v605_v24  }
  0xbf   : > { %848 = vperm.xlu0 %3829, %v604_v26   ;;  %v3878_v26 = vld [vmem:[%s4841_s0 + $0x68] sm:$0xff]  }
  0xc2   : > { %858 = vperm.xlu1 %3830, %v606_v37  }
  0xc3   : > { %863 = vperm.xlu0 %3829, %v607_v38   ;;  %v3883_v38 = vld [vmem:[%s4841_s0 + $0x1a8] sm:$0xff]  }
  0xc6   : > { %868 = vperm.xlu1 %3830, %v608_v45  }
  0xc7   : > { %873 = vperm.xlu0 %3829, %v609_v47  }
  0xca   : > { %878 = vperm.xlu1 %3830, %v610_v55  }
  0xcb   : > { %883 = vperm.xlu0 %3829, %v611_v56  }
  0xd0   : > { %v707_v58 = vpop.permute.xlu1 %706 }
  0xd1   : > { %v703_v59 = vpop.permute.xlu0 %702 }
  0xd4   : > { %v709_v60 = vpop.permute.xlu1 %708 }
  0xd5   : > { %v705_v61 = vpop.permute.xlu0 %704  ;;  %v716_v0 = vsel %vm714_vm2, %v707_v58, %v709_v60  ;;  %v3870_v60 = vld [vmem:[%s4841_s0 + $0x48] sm:$0xff]  }
  0xd6   : > { %v715_v62 = vsel %vm714_vm2, %v703_v59, %v705_v61 }
  0xd7   : > { %3377 = vmatprep.subr.bf16.mxu1 %v715_v62 }
  0xd8   : > { %3378 = vmatpush3.bf16.msra.mxu1 %v715_v62  ;;  %v713_v63 = vpop.permute.xlu1 %712  ;;  %v612_v62 = vld [vmem:[%s4842_s1 + $0x40] sm:$0xff] }
  0xd9   : > { %3379 = vmatprep.subr.bf16.mxu1 %v716_v0  ;;  %v711_v1 = vpop.permute.xlu0 %710  ;;  %888 = vperm.xlu1 %3830, %v612_v62   ;;  %v3891_v62 = vld [vmem:[%s4841_s0 + $0x1c8] sm:$0xff]  }
  0xda   : > { %v717_v2 = vsel %vm714_vm2, %v711_v1, %v713_v63  ;;  %v613_v63 = vld [vmem:[%s4842_s1 + $0x48] sm:$0xff] }
  0xdb   : > { %v747_v5 = vsel %vm745_vm1, %v717_v2, 0  ;;  %893 = vperm.xlu0 %3829, %v613_v63   ;;  %v3892_v63 = vld [vmem:[%s4841_s0 + $0xa0] sm:$0xff]  }
  0xdc   : > { %3380 = vmatpush3.bf16.msra.mxu1 %v716_v0  ;;  %v1890_v3 = vpop.permute.xlu1 %1889  ;;  %v3871_v0 = vld [vmem:[%s4841_s0 + $0x178] sm:$0xff]  }
  0xdd   : > { %3725 = vmatprep.subr.msk.bf16.mxu1 %vm745_vm1, %v717_v2  ;;  %v1888_v4 = vpop.permute.xlu0 %1887  ;;  %v3872_v2 = vld [vmem:[%s4841_s0 + $0x50] sm:$0xff]  }
  0xde   : > { %v1900_v6 = vsel %vm1899_vm3, %v1888_v4, %v1890_v3  ;;  %v3873_v4 = vld [vmem:[%s4841_s0 + $0x180] sm:$0xff]  }
  0xdf   : > { %3487 = vmatprep.subr.bf16.mxu0 %v1900_v6 }
  0xe0   : > { %3382 = vmatpush3.bf16.msra.mxu1 %v747_v5  ;;  %3488 = vmatpush3.bf16.msra.mxu0 %v1900_v6  ;;  %v1894_v8 = vpop.permute.xlu1 %1893  ;;  %v614_v6 = vld [vmem:[%s4842_s1 + $0x50] sm:$0xff] }
  0xe1   : > { %v1892_v10 = vpop.permute.xlu0 %1891  ;;  %898 = vperm.xlu1 %3830, %v614_v6  }
  0xe2   : > { %v1901_v11 = vsel %vm1899_vm3, %v1892_v10, %v1894_v8 }
  0xe3   : > { %3384 = vmatmul.mubr.msk.bf16.vlgmr.msra.gmra.mrb[0].mxu1 %vm720_vm0, %v3854_v7  ;;  %3489 = vmatprep.subr.bf16.mxu0 %v1901_v11  ;;  %v615_v7 = vld [vmem:[%s4842_s1 + $0x58] sm:$0xff] }
  0xe4   : > { %3490 = vmatpush3.bf16.msra.mxu0 %v1901_v11  ;;  %v1898_v12 = vpop.permute.xlu1 %1897  ;;  %3387 = vmatprep.mubr.msk.bf16.mxu1 %vm720_vm0, %v3856_v9  ;;  %v3874_v11 = vld [vmem:[%s4841_s0 + $0x58] sm:$0xff]  }
  0xe5   : > { %v1896_v13 = vpop.permute.xlu0 %1895  ;;  %903 = vperm.xlu0 %3829, %v615_v7   ;;  %v3894_v7 = vld [vmem:[%s4841_s0 + $0xa8] sm:$0xff]  }
  0xe6   : > { %v1902_v14 = vsel %vm1899_vm3, %v1896_v13, %v1898_v12  ;;  %v616_v12 = vld [vmem:[%s4842_s1 + $0x60] sm:$0xff]  ;;  %v617_v13 = vld [vmem:[%s4842_s1 + $0x68] sm:$0xff] }
  0xe7   : > { %v1930_v15 = vsel %vm745_vm1, %v1902_v14, 0  ;;  %3731 = vmatprep.subr.msk.bf16.mxu0 %vm745_vm1, %v1902_v14  ;;  %v3875_v14 = vld [vmem:[%s4841_s0 + $0x188] sm:$0xff]   ;;  %908 = vperm.xlu1 %3830, %v616_v12  }
  0xe8   : > { %3492 = vmatpush3.bf16.msra.mxu0 %v1930_v15  ;;  %v1002_v17 = vpop.permute.xlu1 %1001  ;;  %v3876_v15 = vld [vmem:[%s4841_s0 + $0x60] sm:$0xff]  }
  0xe9   : > { %v1000_v19 = vpop.permute.xlu0 %999  ;;  %913 = vperm.xlu0 %3829, %v617_v13   ;;  %v3898_v13 = vld [vmem:[%s4841_s0 + $0xb8] sm:$0xff]  }
  0xea   : > { %v1012_v22 = vsel %vm1011_vm4, %v1000_v19, %v1002_v17  ;;  %v3877_v17 = vld [vmem:[%s4841_s0 + $0x190] sm:$0xff]  }
  0xeb   : > { %3388 = vmatmul.mubr.msk.bf16.gmra.mrb[4].mxu1 %vm720_vm0, %v3858_v16  ;;  %3399 = vmatprep.subr.bf16.mxu1 %v1012_v22 }
  0xec   : > { %3494 = vmatmul.mubr.msk.bf16.vlgmr.msra.gmra.mrb[0].mxu0 %vm720_vm0, %v3859_v18  ;;  %3400 = vmatpush3.bf16.msra.mxu1 %v1012_v22  ;;  %v1006_v23 = vpop.permute.xlu1 %1005  ;;  %v619_v22 = vld [vmem:[%s4842_s1 + $0x78] sm:$0xff] }
  0xed   : > { %3391 = vmatprep.mubr.msk.bf16.mxu1 %vm720_vm0, %v3860_v20  ;;  %3497 = vmatprep.mubr.msk.bf16.mxu0 %vm720_vm0, %v3861_v21  ;;  %v1004_v25 = vpop.permute.xlu0 %1003  ;;  %v618_v21 = vld [vmem:[%s4842_s1 + $0x70] sm:$0xff] }
  0xee   : > { %v1013_v27 = vsel %vm1011_vm4, %v1004_v25, %v1006_v23  ;;  %918 = vperm.xlu1 %3830, %v618_v21   ;;  %923 = vperm.xlu0 %3829, %v619_v22   ;;  %v3906_v21 = vld [vmem:[%s4841_s0 + $0xd8] sm:$0xff]   ;;  %v3907_v22 = vld [vmem:[%s4841_s0 + $0x208] sm:$0xff]  }
  0xef   : > { %3401 = vmatprep.subr.bf16.mxu1 %v1013_v27 }
  0xf0   : > { %3402 = vmatpush3.bf16.msra.mxu1 %v1013_v27  ;;  %v1010_v31 = vpop.permute.xlu1 %1009  ;;  %v3879_v27 = vld [vmem:[%s4841_s0 + $0x198] sm:$0xff]  }
  0xf1   : > { %v1008_v33 = vpop.permute.xlu0 %1007 }
  0xf2   : > { %v1014_v35 = vsel %vm1011_vm4, %v1008_v33, %v1010_v31 }
  0xf3   : > { %3392 = vmatmul.mubr.msk.bf16.gmra.mrb[8].mxu1 %vm720_vm0, %v3862_v29  ;;  %v1042_v36 = vsel %vm745_vm1, %v1014_v35, 0  ;;  %3726 = vmatprep.subr.msk.bf16.mxu1 %vm745_vm1, %v1014_v35 }
  0xf4   : > { %3498 = vmatmul.mubr.msk.bf16.gmra.mrb[4].mxu0 %vm720_vm0, %v3863_v30  ;;  %v2105_v39 = vpop.permute.xlu1 %2104  ;;  %3395 = vmatprep.mubr.msk.bf16.mxu1 %vm720_vm0, %v3864_v32  ;;  %v3881_v30 = vld [vmem:[%s4841_s0 + $0x1a0] sm:$0xff]  }
  0xf5   : > { %3404 = vmatpush3.bf16.msra.mxu1 %v1042_v36  ;;  %3501 = vmatprep.mubr.msk.bf16.mxu0 %vm720_vm0, %v3865_v34  ;;  %v2103_v40 = vpop.permute.xlu0 %2102  ;;  %v3882_v36 = vld [vmem:[%s4841_s0 + $0x78] sm:$0xff]  }
  0xf6   : > { %v2115_v42 = vsel %vm2114_vm5, %v2103_v40, %v2105_v39  ;;  %v3884_v39 = vld [vmem:[%s4841_s0 + $0x80] sm:$0xff]  }
  0xf7   : > { %3509 = vmatprep.subr.bf16.mxu0 %v2115_v42 }
  0xf8   : > { %3510 = vmatpush3.bf16.msra.mxu0 %v2115_v42  ;;  %v2109_v49 = vpop.permute.xlu1 %2108  ;;  %v3885_v42 = vld [vmem:[%s4841_s0 + $0x1b0] sm:$0xff]  }
  0xf9   : > { %v2107_v52 = vpop.permute.xlu0 %2106 }
  0xfa   : > { %v2116_v54 = vsel %vm2114_vm5, %v2107_v52, %v2109_v49  ;;  %v3886_v49 = vld [vmem:[%s4841_s0 + $0x88] sm:$0xff]   ;;  %v3888_v52 = vld [vmem:[%s4841_s0 + $0x90] sm:$0xff]  }
  0xfb   : > { %3396 = vmatmul.mubr.msk.bf16.gmra.mrb[12].mxu1 %vm720_vm0, %v3866_v44  ;;  %3511 = vmatprep.subr.bf16.mxu0 %v2116_v54 }
  0xfc   : > { %3502 = vmatmul.mubr.msk.bf16.gmra.mrb[8].mxu0 %vm720_vm0, %v3867_v48  ;;  %3405 = vmatprep.mubr.msk.bf16.mxu1 %vm720_vm0, %v3868_v51  ;;  %v2113_v57 = vpop.permute.xlu1 %2112  ;;  %v3887_v51 = vld [vmem:[%s4841_s0 + $0x1b8] sm:$0xff]  }
  0xfd   : > { %3505 = vmatprep.mubr.msk.bf16.mxu0 %vm720_vm0, %v3869_v53  ;;  %3512 = vmatpush3.bf16.msra.mxu0 %v2116_v54  ;;  %v2111_v58 = vpop.permute.xlu0 %2110  ;;  %v3889_v54 = vld [vmem:[%s4841_s0 + $0x1c0] sm:$0xff]  }
  0xfe   : > { %v2117_v59 = vsel %vm2114_vm5, %v2111_v58, %v2113_v57 }
  0xff   : > { %v2145_v61 = vsel %vm745_vm1, %v2117_v59, 0  ;;  %3732 = vmatprep.subr.msk.bf16.mxu0 %vm745_vm1, %v2117_v59 }
 0x100   : > { %v1217_v1 = vpop.permute.xlu1 %1216 }
 0x101   : > { %3514 = vmatpush3.bf16.msra.mxu0 %v2145_v61  ;;  %v1215_v3 = vpop.permute.xlu0 %1214 }
 0x102   : > { %v1227_v5 = vsel %vm1226_vm6, %v1215_v3, %v1217_v1  ;;  %v3893_v1 = vld [vmem:[%s4841_s0 + $0x1d0] sm:$0xff]  }
 0x103   : > { %3406 = vmatmul.mubr.msk.bf16.vlgmr.msra.gmra.mrb[0].mxu1 %vm720_vm0, %v3870_v60  ;;  %3421 = vmatprep.subr.bf16.mxu1 %v1227_v5  ;;  %v3890_v60 = vld [vmem:[%s4841_s0 + $0x98] sm:$0xff]  }
 0x104   : > { %3506 = vmatmul.mubr.msk.bf16.gmra.mrb[12].mxu0 %vm720_vm0, %v3871_v0  ;;  %3409 = vmatprep.mubr.msk.bf16.mxu1 %vm720_vm0, %v3872_v2  ;;  %v1221_v8 = vpop.permute.xlu1 %1220 }
 0x105   : > { %3515 = vmatprep.mubr.msk.bf16.mxu0 %vm720_vm0, %v3873_v4  ;;  %3422 = vmatpush3.bf16.msra.mxu1 %v1227_v5  ;;  %v1219_v9 = vpop.permute.xlu0 %1218 }
 0x106   : > { %v1228_v10 = vsel %vm1226_vm6, %v1219_v9, %v1221_v8  ;;  %v3895_v8 = vld [vmem:[%s4841_s0 + $0x1d8] sm:$0xff]   ;;  %v3896_v9 = vld [vmem:[%s4841_s0 + $0xb0] sm:$0xff]  }
 0x107   : > { %3423 = vmatprep.subr.bf16.mxu1 %v1228_v10 }
 0x108   : > { %v1225_v16 = vpop.permute.xlu1 %1224 }
 0x109   : > { %3424 = vmatpush3.bf16.msra.mxu1 %v1228_v10  ;;  %v1223_v18 = vpop.permute.xlu0 %1222 }
 0x10a   : > { %v1229_v19 = vsel %vm1226_vm6, %v1223_v18, %v1225_v16  ;;  %v3901_v16 = vld [vmem:[%s4841_s0 + $0x1f0] sm:$0xff]   ;;  %v3903_v18 = vld [vmem:[%s4841_s0 + $0x1f8] sm:$0xff]  }
 0x10b   : > { %3410 = vmatmul.mubr.msk.bf16.gmra.mrb[4].mxu1 %vm720_vm0, %v3874_v11  ;;  %v1257_v20 = vsel %vm745_vm1, %v1229_v19, 0  ;;  %3727 = vmatprep.subr.msk.bf16.mxu1 %vm745_vm1, %v1229_v19  ;;  %v3897_v11 = vld [vmem:[%s4841_s0 + $0x1e0] sm:$0xff]   ;;  %v3904_v19 = vld [vmem:[%s4841_s0 + $0xd0] sm:$0xff]  }
 0x10c   : > { %3516 = vmatmul.mubr.msk.bf16.vlgmr.msra.gmra.mrb[0].mxu0 %vm720_vm0, %v3875_v14  ;;  %3413 = vmatprep.mubr.msk.bf16.mxu1 %vm720_vm0, %v3876_v15  ;;  %v2320_v23 = vpop.permute.xlu1 %2319  ;;  %v3899_v14 = vld [vmem:[%s4841_s0 + $0x1e8] sm:$0xff]   ;;  %v3900_v15 = vld [vmem:[%s4841_s0 + $0xc0] sm:$0xff]  }
 0x10d   : > { %3519 = vmatprep.mubr.msk.bf16.mxu0 %vm720_vm0, %v3877_v17  ;;  %3426 = vmatpush3.bf16.msra.mxu1 %v1257_v20  ;;  %v2318_v24 = vpop.permute.xlu0 %2317  ;;  %v3902_v17 = vld [vmem:[%s4841_s0 + $0xc8] sm:$0xff]   ;;  %v3905_v20 = vld [vmem:[%s4841_s0 + $0x200] sm:$0xff]  }
 0x10e   : > { %v2330_v25 = vsel %vm2329_vm7, %v2318_v24, %v2320_v23  ;;  %v3908_v23 = vld [vmem:[%s4841_s0 + $0xe0] sm:$0xff]   ;;  %v3909_v24 = vld [vmem:[%s4841_s0 + $0x210] sm:$0xff]  }
 0x10f   : > { %3531 = vmatprep.subr.bf16.mxu0 %v2330_v25 }
 0x110   : > { %3532 = vmatpush3.bf16.msra.mxu0 %v2330_v25  ;;  %v2324_v29 = vpop.permute.xlu1 %2323  ;;  %v3913_v25 = vld [vmem:[%s4841_s0 + $0x220] sm:$0xff]  }
 0x111   : > { %v2322_v31 = vpop.permute.xlu0 %2321 }
 0x112   : > { %v2331_v32 = vsel %vm2329_vm7, %v2322_v31, %v2324_v29  ;;  %v3918_v29 = vld [vmem:[%s4841_s0 + $0x128] sm:$0xff]   ;;  %v3920_v31 = vld [vmem:[%s4841_s0 + $0x130] sm:$0xff]  }
 0x113   : > { %3414 = vmatmul.mubr.msk.bf16.gmra.mrb[8].mxu1 %vm720_vm0, %v3878_v26  ;;  %3533 = vmatprep.subr.bf16.mxu0 %v2331_v32  ;;  %v3915_v26 = vld [vmem:[%s4841_s0 + $0x228] sm:$0xff]  }
 0x114   : > { %3520 = vmatmul.mubr.msk.bf16.gmra.mrb[4].mxu0 %vm720_vm0, %v3879_v27  ;;  %3417 = vmatprep.mubr.msk.bf16.mxu1 %vm720_vm0, %v3880_v28  ;;  %v2328_v33 = vpop.permute.xlu1 %2327  ;;  %v3916_v27 = vld [vmem:[%s4841_s0 + $0x120] sm:$0xff]   ;;  %v3917_v28 = vld [vmem:[%s4841_s0 + $0x230] sm:$0xff]  }
 0x115   : > { %3523 = vmatprep.mubr.msk.bf16.mxu0 %vm720_vm0, %v3881_v30  ;;  %3534 = vmatpush3.bf16.msra.mxu0 %v2331_v32  ;;  %v2326_v34 = vpop.permute.xlu0 %2325  ;;  %v3919_v30 = vld [vmem:[%s4841_s0 + $0x238] sm:$0xff]  }
 0x116   : > { %v2332_v35 = vsel %vm2329_vm7, %v2326_v34, %v2328_v33  ;;  %v3921_v32 = vld [vmem:[%s4841_s0 + $0x138] sm:$0xff]  }
 0x117   : > { %v2360_v37 = vsel %vm745_vm1, %v2332_v35, 0  ;;  %3733 = vmatprep.subr.msk.bf16.mxu0 %vm745_vm1, %v2332_v35 }
 0x118   : > { %v1432_v40 = vpop.permute.xlu1 %1431 }
 0x119   : > { %3536 = vmatpush3.bf16.msra.mxu0 %v2360_v37  ;;  %v1430_v44 = vpop.permute.xlu0 %1429 }
 0x11a   : > { %v1442_v45 = vsel %vm1441_vm8, %v1430_v44, %v1432_v40 }
 0x11b   : > { %3418 = vmatmul.mubr.msk.bf16.gmra.mrb[12].mxu1 %vm720_vm0, %v3882_v36  ;;  %3443 = vmatprep.subr.bf16.mxu1 %v1442_v45 }
 0x11c   : > { %3524 = vmatmul.mubr.msk.bf16.gmra.mrb[8].mxu0 %vm720_vm0, %v3883_v38  ;;  %3427 = vmatprep.mubr.msk.bf16.mxu1 %vm720_vm0, %v3884_v39  ;;  %v1436_v47 = vpop.permute.xlu1 %1435 }
 0x11d   : > { %3527 = vmatprep.mubr.msk.bf16.mxu0 %vm720_vm0, %v3885_v42  ;;  %v1434_v48 = vpop.permute.xlu0 %1433 }
 0x11e   : > { %v1443_v56 = vsel %vm1441_vm8, %v1434_v48, %v1436_v47 }
 0x120   : > { %v1440_v53 = vpop.permute.xlu1 %1439 }
 0x121   : > { %v1438_v55 = vpop.permute.xlu0 %1437 }
 0x122   : > { %v1444_v61 = vsel %vm1441_vm8, %v1438_v55, %v1440_v53 }
 0x123   : > { %3428 = vmatmul.mubr.msk.bf16.vlgmr.msra.gmra.mrb[0].mxu1 %vm720_vm0, %v3886_v49  ;;  %v1472_v3 = vsel %vm745_vm1, %v1444_v61, 0 }
 0x124   : > { %3528 = vmatmul.mubr.msk.bf16.gmra.mrb[12].mxu0 %vm720_vm0, %v3887_v51  ;;  %3431 = vmatprep.mubr.msk.bf16.mxu1 %vm720_vm0, %v3888_v52  ;;  %v2535_v57 = vpop.permute.xlu1 %2534 }
 0x125   : > { %3537 = vmatprep.mubr.msk.bf16.mxu0 %vm720_vm0, %v3889_v54  ;;  %3444 = vmatpush3.bf16.msra.mxu1 %v1442_v45  ;;  %v2533_v58 = vpop.permute.xlu0 %2532 }
 0x126   : > { %3445 = vmatprep.subr.bf16.mxu1 %v1443_v56  ;;  %v2545_v59 = vsel %vm2544_vm9, %v2533_v58, %v2535_v57 }
 0x127   : > { %3553 = vmatprep.subr.bf16.mxu0 %v2545_v59 }
 0x128   : > { %v2539_v0 = vpop.permute.xlu1 %2538 }
 0x129   : > { %3446 = vmatpush3.bf16.msra.mxu1 %v1443_v56  ;;  %v2537_v2 = vpop.permute.xlu0 %2536 }
 0x12a   : > { %3728 = vmatprep.subr.msk.bf16.mxu1 %vm745_vm1, %v1444_v61  ;;  %v2546_v4 = vsel %vm2544_vm9, %v2537_v2, %v2539_v0 }
 0x12b   : > { %3432 = vmatmul.mubr.msk.bf16.gmra.mrb[4].mxu1 %vm720_vm0, %v3890_v60 }
 0x12c   : > { %3538 = vmatmul.mubr.msk.bf16.vlgmr.msra.gmra.mrb[0].mxu0 %vm720_vm0, %v3891_v62  ;;  %3435 = vmatprep.mubr.msk.bf16.mxu1 %vm720_vm0, %v3892_v63  ;;  %v2543_v5 = vpop.permute.xlu1 %2542 }
 0x12d   : > { %3541 = vmatprep.mubr.msk.bf16.mxu0 %vm720_vm0, %v3893_v1  ;;  %3448 = vmatpush3.bf16.msra.mxu1 %v1472_v3  ;;  %v2541_v6 = vpop.permute.xlu0 %2540 }
 0x12e   : > { %3554 = vmatpush3.bf16.msra.mxu0 %v2545_v59  ;;  %3575 = vmatprep.subr.bf16.mxu1 %v4304_v41  ;;  %v2547_v10 = vsel %vm2544_vm9, %v2541_v6, %v2543_v5 }
 0x12f   : > { %3555 = vmatprep.subr.bf16.mxu0 %v2546_v4  ;;  %v2575_v12 = vsel %vm745_vm1, %v2547_v10, 0 }
 0x132   : > { %3556 = vmatpush3.bf16.msra.mxu0 %v2546_v4 }
 0x133   : > { %3436 = vmatmul.mubr.msk.bf16.gmra.mrb[8].mxu1 %vm720_vm0, %v3894_v7  ;;  %3734 = vmatprep.subr.msk.bf16.mxu0 %vm745_vm1, %v2547_v10 }
 0x134   : > { %3542 = vmatmul.mubr.msk.bf16.gmra.mrb[4].mxu0 %vm720_vm0, %v3895_v8  ;;  %3439 = vmatprep.mubr.msk.bf16.mxu1 %vm720_vm0, %v3896_v9 }
 0x135   : > { %3545 = vmatprep.mubr.msk.bf16.mxu0 %vm720_vm0, %v3897_v11 }
 0x136   : > { %3558 = vmatpush3.bf16.msra.mxu0 %v2575_v12 }
 0x13b   : > { %3440 = vmatmul.mubr.msk.bf16.gmra.mrb[12].mxu1 %vm720_vm0, %v3898_v13 }
 0x13c   : > { %3546 = vmatmul.mubr.msk.bf16.gmra.mrb[8].mxu0 %vm720_vm0, %v3899_v14  ;;  %3449 = vmatprep.mubr.msk.bf16.mxu1 %vm720_vm0, %v3900_v15 }
 0x13d   : > { %3549 = vmatprep.mubr.msk.bf16.mxu0 %vm720_vm0, %v3901_v16  ;;  %v854_v33 = vpop.permute.xlu1 %853 }
 0x13e   : > { %v849_v34 = vpop.permute.xlu0 %848 }
 0x141   : > { %v859_v36 = vpop.permute.xlu1 %858 }
 0x142   : > { %v864_v38 = vpop.permute.xlu0 %863 }
 0x143   : > { %3450 = vmatmul.mubr.msk.bf16.vlgmr.msra.gmra.mrb[0].mxu1 %vm720_vm0, %v3902_v17 }
 0x144   : > { %3550 = vmatmul.mubr.msk.bf16.gmra.mrb[12].mxu0 %vm720_vm0, %v3903_v18  ;;  %3453 = vmatprep.mubr.msk.bf16.mxu1 %vm720_vm0, %v3904_v19 }
 0x145   : > { %3559 = vmatprep.mubr.msk.bf16.mxu0 %vm720_vm0, %v3905_v20  ;;  %3578 = vmatpush3.bf16.msra.mxu1 %v4304_v41  ;;  %v3910_v41 = vld [vmem:[%s4841_s0 + $0xe8] sm:$0xff]   ;;  %v869_v42 = vpop.permute.xlu1 %868 }
 0x146   : > { %3576 = vmatprep.subr.bf16.mxu1 %v4309_v43  ;;  %v874_v45 = vpop.permute.xlu0 %873 }
 0x149   : > { %3579 = vmatpush3.bf16.msra.mxu1 %v4309_v43  ;;  %v3911_v43 = vld [vmem:[%s4841_s0 + $0x218] sm:$0xff]   ;;  %v879_v63 = vpop.permute.xlu1 %878 }
 0x14a   : > { %3730 = vmatprep.subr.msk.bf16.mxu1 %vm745_vm1, %v4318_v46  ;;  %v3912_v46 = vld [vmem:[%s4841_s0 + $0xf0] sm:$0xff]   ;;  %v884_v1 = vpop.permute.xlu0 %883 }
 0x14b   : > { %3454 = vmatmul.mubr.msk.bf16.gmra.mrb[4].mxu1 %vm720_vm0, %v3906_v21 }
 0x14c   : > { %3560 = vmatmul.mubr.msk.bf16.vlgmr.msra.gmra.mrb[0].mxu0 %vm720_vm0, %v3907_v22  ;;  %3457 = vmatprep.mubr.msk.bf16.mxu1 %vm720_vm0, %v3908_v23 }
 0x14d   : > { %3563 = vmatprep.mubr.msk.bf16.mxu0 %vm720_vm0, %v3909_v24  ;;  %3580 = vmatpush3.bf16.msra.mxu1 %v4329_v50  ;;  %v3914_v50 = vld [vmem:[%s4841_s0 + $0xf8] sm:$0xff]  }
 0x153   : > { %3458 = vmatmul.mubr.msk.bf16.gmra.mrb[8].mxu1 %vm720_vm0, %v3910_v41 }
 0x154   : > { %3564 = vmatmul.mubr.msk.bf16.gmra.mrb[4].mxu0 %vm720_vm0, %v3911_v43  ;;  %3461 = vmatprep.mubr.msk.bf16.mxu1 %vm720_vm0, %v3912_v46 }
 0x155   : > { %3567 = vmatprep.mubr.msk.bf16.mxu0 %vm720_vm0, %v3913_v25 }
 0x158   : > { %v889_v11 = vpop.permute.xlu1 %888 }
 0x15a   : > { %v894_v18 = vpop.permute.xlu0 %893 }
 0x15b   : > { %3462 = vmatmul.mubr.msk.bf16.gmra.mrb[12].mxu1 %vm720_vm0, %v3914_v50 }
 0x15c   : > { %3568 = vmatmul.mubr.msk.bf16.gmra.mrb[8].mxu0 %vm720_vm0, %v3915_v26  ;;  %3479 = vmatprep.mubr.msk.bf16.mxu1 %vm720_vm0, %v3916_v27 }
 0x15d   : > { %3571 = vmatprep.mubr.msk.bf16.mxu0 %vm720_vm0, %v3917_v28 }
 0x160   : > { %v899_v22 = vpop.permute.xlu1 %898 }
 0x163   : > { %3480 = vmatmul.mubr.msk.bf16.vlgmr.msra.gmra.mrb[8].mxu1 %vm720_vm0, %v3918_v29 }
 0x164   : > { %3572 = vmatmul.mubr.msk.bf16.gmra.mrb[12].mxu0 %vm720_vm0, %v3919_v30  ;;  %3483 = vmatprep.mubr.msk.bf16.mxu1 %vm720_vm0, %v3920_v31  ;;  %v904_v25 = vpop.permute.xlu0 %903 }
 0x166   : > { %v909_v50 = vpop.permute.xlu1 %908 }
 0x16b   : > { %3484 = vmatmul.mubr.msk.bf16.gmra.mrb[12].mxu1 %vm720_vm0, %v3921_v32 }
 0x216   : > { %v3451_v35 = vpop.f32.mrb[0].mxu1 }
 0x217   : > { %v1508_v37 = vpop.f32.mrb[1].mxu1  ;;  %v3581_v44 = vadd.f32 %v3451_v35, %v859_v36 }
 0x218   : > { %v3452_v39 = vpop.f32.mrb[2].mxu1  ;;  %v3583_v48 = vadd.f32 %v1508_v37, %v849_v34 }
 0x219   : > { %v1511_v40 = vpop.f32.mrb[3].mxu1  ;;  %v3585_v52 = vadd.f32 %v3452_v39, %v864_v38 }
 0x21a   : > { %v3587_v56 = vadd.f32 %v1511_v40, %v854_v33  ;;  %v914_v40 = vpop.permute.xlu0 %913 }
 0x21e   : > { %v3455_v47 = vpop.f32.mrb[4].mxu1 }
 0x21f   : > { %v3561_v49 = vpop.f32.mrb[0].mxu0  ;;  %v1524_v51 = vpop.f32.mrb[5].mxu1  ;;  %v3589_v0 = vadd.f32 %v3455_v47, %v879_v63 }
 0x220   : > { %v3582_v53 = vadd.f32 %v3581_v44, %v3561_v49  ;;  %v2611_v54 = vpop.f32.mrb[1].mxu0  ;;  %v3456_v55 = vpop.f32.mrb[6].mxu1  ;;  %v3591_v2 = vadd.f32 %v1524_v51, %v869_v42 }
 0x221   : > { %v3584_v57 = vadd.f32 %v3583_v48, %v2611_v54  ;;  %v3562_v58 = vpop.f32.mrb[2].mxu0  ;;  %v1527_v59 = vpop.f32.mrb[7].mxu1  ;;  %v3593_v4 = vadd.f32 %v3456_v55, %v884_v1 }
 0x222   : > { %v3586_v60 = vadd.f32 %v3585_v52, %v3562_v58  ;;  %v2614_v61 = vpop.f32.mrb[3].mxu0  ;;  %v3595_v7 = vadd.f32 %v1527_v59, %v874_v45  ;;  %v2692_v10 = vmul.f32 0.5, %v3582_v53 }
 0x223   : > { %v3588_v62 = vadd.f32 %v3587_v56, %v2614_v61  ;;  %v2690_v14 = vmul.f32 0.5, %v3584_v57  ;;  %v919_v56 = vpop.permute.xlu1 %918 }
 0x224   : > { %v2693_v16 = vmul.f32 0.5, %v3586_v60  ;;  %3922 = vtanh.f32 %v2692_v10 }
 0x225   : > { %3924 = vtanh.f32 %v2690_v14  ;;  %v2691_v43 = vmul.f32 0.5, %v3588_v62 }
 0x226   : > { %3926 = vtanh.f32 %v2693_v16 }
 0x227   : > { %v3565_v3 = vpop.f32.mrb[4].mxu0 }
 0x228   : > { %v3590_v5 = vadd.f32 %v3589_v0, %v3565_v3  ;;  %v2627_v6 = vpop.f32.mrb[5].mxu0  ;;  %v924_v0 = vpop.permute.xlu0 %923 }
 0x229   : > { %v3592_v8 = vadd.f32 %v3591_v2, %v2627_v6  ;;  %v3566_v9 = vpop.f32.mrb[6].mxu0 }
 0x22a   : > { %v3594_v12 = vadd.f32 %v3593_v4, %v3566_v9  ;;  %v2630_v13 = vpop.f32.mrb[7].mxu0  ;;  %v2708_v17 = vmul.f32 0.5, %v3590_v5 }
 0x22b   : > { %v3596_v15 = vadd.f32 %v3595_v7, %v2630_v13  ;;  %v2706_v19 = vmul.f32 0.5, %v3592_v8  ;;  %v2744_v13 = vld [vmem:[%s525_s2 + $0x10] sm:$0xff] }
 0x22c   : > { %v2709_v20 = vmul.f32 0.5, %v3594_v12  ;;  %3928 = vtanh.f32 %v2708_v17 }
 0x22d   : > { %v2707_v23 = vmul.f32 0.5, %v3596_v15  ;;  %3930 = vtanh.f32 %v2706_v19 }
 0x22e   : > { %3932 = vtanh.f32 %v2709_v20  ;;  %v3923_v30 = vpop.eup %3922 }
 0x22f   : > { %v3569_v21 = vpop.f32.mrb[8].mxu0  ;;  %3934 = vtanh.f32 %v2707_v23  ;;  %v3925_v34 = vpop.eup %3924  ;;  %v2700_v54 = vadd.f32 1.0, %v3923_v30 }
 0x230   : > { %v2643_v24 = vpop.f32.mrb[9].mxu0  ;;  %3936 = vtanh.f32 %v2691_v43  ;;  %v3927_v39 = vpop.eup %3926  ;;  %v2698_v62 = vadd.f32 1.0, %v3925_v34 }
 0x231   : > { %v3570_v41 = vpop.f32.mrb[10].mxu0  ;;  %v2701_v3 = vadd.f32 1.0, %v3927_v39  ;;  %v2704_v8 = vmul.f32 0.5, %v2700_v54 }
 0x232   : > { %v2646_v46 = vpop.f32.mrb[11].mxu0  ;;  %v2702_v17 = vmul.f32 0.5, %v2698_v62 }
 0x233   : > { %v2705_v23 = vmul.f32 0.5, %v2701_v3 }
 0x236   : > { %v3481_v26 = vpop.f32.mrb[8].mxu1  ;;  %v3929_v47 = vpop.eup %3928 }
 0x237   : > { %v3597_v27 = vadd.f32 %v3481_v26, %v899_v22  ;;  %v3573_v28 = vpop.f32.mrb[12].mxu0  ;;  %v1757_v29 = vpop.f32.mrb[9].mxu1  ;;  %v2716_v55 = vadd.f32 1.0, %v3929_v47 }
 0x238   : > { %v3599_v31 = vadd.f32 %v1757_v29, %v889_v11  ;;  %v2659_v32 = vpop.f32.mrb[13].mxu0  ;;  %v3482_v33 = vpop.f32.mrb[10].mxu1 }
 0x239   : > { %v3598_v35 = vadd.f32 %v3597_v27, %v3569_v21  ;;  %v3601_v36 = vadd.f32 %v3482_v33, %v904_v25  ;;  %v3574_v37 = vpop.f32.mrb[14].mxu0  ;;  %v1760_v38 = vpop.f32.mrb[11].mxu1  ;;  %v2720_v9 = vmul.f32 0.5, %v2716_v55 }
 0x23a   : > { %v3600_v42 = vadd.f32 %v3599_v31, %v2643_v24  ;;  %v3603_v44 = vadd.f32 %v1760_v38, %v894_v18  ;;  %v2662_v45 = vpop.f32.mrb[15].mxu0  ;;  %v3931_v49 = vpop.eup %3930  ;;  %v2742_v18 = vld [vmem:[%s525_s2] sm:$0xff]  ;;  %v2745_v24 = vld [vmem:[%s525_s2 + $0x18] sm:$0xff] }
 0x23b   : > { %3938 = vtanh.f32 %v3598_v35  ;;  %v3602_v48 = vadd.f32 %v3601_v36, %v3570_v41  ;;  %v3933_v52 = vpop.eup %3932  ;;  %v2714_v58 = vadd.f32 1.0, %v3931_v49  ;;  %v2748_v25 = vmul.f32 %v2744_v13, %v2720_v9 }
 0x23c   : > { %3940 = vtanh.f32 %v3600_v42  ;;  %v3604_v51 = vadd.f32 %v3603_v44, %v2646_v46  ;;  %v3935_v53 = vpop.eup %3934  ;;  %v2717_v63 = vadd.f32 1.0, %v3933_v52 }
 0x23d   : > { %3942 = vtanh.f32 %v3602_v48  ;;  %v3937_v61 = vpop.eup %3936  ;;  %v2715_v4 = vadd.f32 1.0, %v3935_v53  ;;  %v2718_v14 = vmul.f32 0.5, %v2714_v58 }
 0x23e   : > { %3944 = vtanh.f32 %v3604_v51  ;;  %v3485_v57 = vpop.f32.mrb[12].mxu1  ;;  %v2699_v12 = vadd.f32 1.0, %v3937_v61  ;;  %v2721_v19 = vmul.f32 0.5, %v2717_v63 }
 0x23f   : > { %v3605_v59 = vadd.f32 %v3485_v57, %v919_v56  ;;  %v1773_v60 = vpop.f32.mrb[13].mxu1  ;;  %v2719_v41 = vmul.f32 0.5, %v2715_v4  ;;  %v2746_v30 = vmul.f32 %v2742_v18, %v2718_v14 }
 0x240   : > { %v3607_v1 = vadd.f32 %v1773_v60, %v909_v50  ;;  %v3486_v2 = vpop.f32.mrb[14].mxu1  ;;  %v2743_v50 = vld [vmem:[%s525_s2 + $0x8] sm:$0xff]  ;;  %v2703_v29 = vmul.f32 0.5, %v2699_v12  ;;  %v2749_v33 = vmul.f32 %v2745_v24, %v2721_v19  ;;  %s3968_s2 = scalar_lea.vmem %s3967_s16, 1024 }
 0x241   : > { %v3606_v5 = vadd.f32 %v3605_v59, %v3573_v28  ;;  %v3609_v6 = vadd.f32 %v3486_v2, %v924_v0  ;;  %v1776_v7 = vpop.f32.mrb[15].mxu1  ;;  %v2747_v36 = vmul.f32 %v2743_v50, %v2719_v41  ;;  %p3970_p9 = scmp.lt.s32.totalorder %s3968_s2, %s3962_s25 }
 0x242   : > { %v3608_v10 = vadd.f32 %v3607_v1, %v2659_v32  ;;  %v3611_v11 = vadd.f32 %v1776_v7, %v914_v40 }
 0x243   : > { %v2728_v15 = vmul.f32 0.5, %v3606_v5  ;;  %v3610_v16 = vadd.f32 %v3609_v6, %v3574_v37  ;;  %p3971_p10 = por %p3970_p9, %p3969_p8 }
 0x244   : > { %v2726_v20 = vmul.f32 0.5, %v3608_v10  ;;  %v3612_v21 = vadd.f32 %v3611_v11, %v2662_v45 }
 0x245   : > { %v3939_v22 = vpop.eup %3938  ;;  %3946 = vtanh.f32 %v2728_v15  ;;  %v2729_v43 = vmul.f32 0.5, %v3610_v16  ;;  %p3972_p12 = pnand %p3971_p10, %p3965_p7 }
 0x246   : > { %v3941_v46 = vpop.eup %3940  ;;  %v2752_v26 = vmul.f32 %v3939_v22, %v2704_v8  ;;  %3948 = vtanh.f32 %v2726_v20  ;;  %v2727_v27 = vmul.f32 0.5, %v3612_v21 }
 0x247   : > { %v3943_v28 = vpop.eup %3942  ;;  %v2750_v31 = vmul.f32 %v3941_v46, %v2702_v17  ;;  %3950 = vtanh.f32 %v2729_v43 }
 0x248   : > { %v3945_v32 = vpop.eup %3944  ;;  %v2756_v34 = vadd.f32 %v2752_v26, %v2748_v25  ;;  %v2753_v35 = vmul.f32 %v3943_v28, %v2705_v23  ;;  %3952 = vtanh.f32 %v2727_v27 }
 0x249   : > { %v2754_v37 = vadd.f32 %v2750_v31, %v2746_v30  ;;  %v2751_v38 = vmul.f32 %v3945_v32, %v2703_v29 }
 0x24a   : > { %2760 = vst [vmem:[%s570_s23 + $0x10] sm:$0xff] %v2756_v34  ;;  %3954 = vtanh.f32 %v2756_v34  ;;  %v2757_v39 = vadd.f32 %v2753_v35, %v2749_v33 }
 0x24b   : > { %2758 = vst [vmem:[%s570_s23] sm:$0xff] %v2754_v37  ;;  %3956 = vtanh.f32 %v2754_v37  ;;  %v2755_v40 = vadd.f32 %v2751_v38, %v2747_v36 }
 0x24c   : > { %2761 = vst [vmem:[%s570_s23 + $0x18] sm:$0xff] %v2757_v39  ;;  %3958 = vtanh.f32 %v2757_v39 }
 0x24d   : > { %2759 = vst [vmem:[%s570_s23 + $0x8] sm:$0xff] %v2755_v40  ;;  %3960 = vtanh.f32 %v2755_v40 }
 0x24e   : > { %3975 = shalt.err (!%p3972_p12)
}
 0x24f   : > { %s3976_s23 = scalar_lea.hbm %s4747_s20, 512  ;;  %s3980_s14 = scalar_lea.hbm %s4848_s7, 3072 }
 0x250   : > { %p3977_p13 = scmp.ne.s32.totalorder %s4747_s20, %s3976_s23  ;;  %p3981_p2 = scmp.lt.u32.totalorder %s4747_s20, %s4848_s7 }
 0x251   : > { %p3982_p3 = scmp.lt.u32.totalorder %s3980_s14, %s3976_s23  ;;  %p3984_p6 = scmp.lt.u32.totalorder %s3976_s23, %s4747_s20 }
 0x252   : > { %p3978_p4 = pnand %p3977_p13, %p4240_p11 }
 0x253   : > { %p3983_p5 = por %p3982_p3, %p3981_p2 }
 0x254   : > { %p3979_p0 = pneg %p3978_p4 }
 0x255   : > { %p3985_p7 = por %p3984_p6, %p3983_p5 }
 0x257   : > { %p3986_p8 = pnand %p3985_p7, %p3979_p0 }
 0x259   : > { %3989 = shalt.err (!%p3986_p8)
}
 0x25a   : > { %s4850_s25 = smov 128   ;;  %s4101_s2 = smov 768   ;;  %v3947_v42 = vpop.eup %3946 }
 0x25b   : > { %s4102_s12 = smov 8   ;;  %s4861_s19 = scalar_lea.sflag [#allocation10], %s4282_s17  ;;  %v3949_v44 = vpop.eup %3948  ;;  %v2736_v45 = vadd.f32 1.0, %v3947_v42 }
 0x25c   : > { %3742 = dma.vmem_to_hbm [thread:$0]  (%p4240_p11), %s4741_s10, 512, %s4747_s20, %s4861_s19, %s4850_s25, %s4101_s2, %s4102_s12   ;;  %v3951_v47 = vpop.eup %3950  ;;  %v2734_v48 = vadd.f32 1.0, %v3949_v44 }
 0x25d   : > { %v3953_v49 = vpop.eup %3952  ;;  %v2740_v51 = vmul.f32 0.5, %v2736_v45  ;;  %v2737_v52 = vadd.f32 1.0, %v3951_v47  ;;  %s563_s23 = scalar_lea.vmem [#allocation7], %s4733_s22  ;;  %s4783_s20 = scalar_lea.hbm %s4847_s6, %s4739_s9 }
 0x25e   : > { %v2738_v53 = vmul.f32 0.5, %v2734_v48  ;;  %v2735_v54 = vadd.f32 1.0, %v3953_v49  ;;  %v3955_v55 = vpop.eup %3954  ;;  %s2792_s21 = sshll.u32 %s563_s23, 4  ;;  %s2775_s14 = scalar_lea.sflag [#allocation8], %s4282_s17  ;;  %s4777_s21 = int_to_ptr.vmem [resolvable:$true] %s2792_s21 }
 0x25f   : > { %v2741_v56 = vmul.f32 0.5, %v2737_v52  ;;  %v3957_v57 = vpop.eup %3956  ;;  %v2768_v58 = vmul.f32 %v3955_v55, %v2740_v51  ;;  %s3990_s27 = scalar_lea.vmem %s4777_s21, 512  ;;  %s4103_s16 = smov [#allocation7]  }
 0x260   : > { %v2739_v59 = vmul.f32 0.5, %v2735_v54  ;;  %v3959_v60 = vpop.eup %3958  ;;  %v2766_v61 = vmul.f32 %v3957_v57, %v2738_v53  ;;  %p3991_p9 = scmp.ne.s32.totalorder %s4777_s21, %s3990_s27  ;;  %s3994_s19 = sshll.u32 %s4103_s16, 4  ;;  %s3995_s19 = int_to_ptr.vmem [resolvable:$false] %s3994_s19 }
 0x261   : > { %v3961_v62 = vpop.eup %3960  ;;  %2772 = vst [vmem:[%s563_s23 + $0x10] sm:$0xff] %v2768_v58  ;;  %v2769_v63 = vmul.f32 %v3959_v60, %v2741_v56  ;;  %s3996_s25 = scalar_lea.vmem %s3995_s19, 1024  ;;  %p3997_p13 = scmp.lt.s32.totalorder %s4777_s21, %s3995_s19 }
 0x262   : > { %2770 = vst [vmem:[%s563_s23] sm:$0xff] %v2766_v61  ;;  %v2767_v0 = vmul.f32 %v3961_v62, %v2739_v59  ;;  %p3992_p10 = pnand %p3991_p9, %p4240_p11  ;;  %p3998_p4 = scmp.lt.s32.totalorder %s3996_s25, %s3990_s27 }
 0x263   : > { %2773 = vst [vmem:[%s563_s23 + $0x18] sm:$0xff] %v2769_v63 }
 0x264   : > { %2771 = vst [vmem:[%s563_s23 + $0x8] sm:$0xff] %v2767_v0  ;;  %p3993_p12 = pneg %p3992_p10  ;;  %p3999_p0 = por %p3998_p4, %p3997_p13 }
 0x266   : > { %p4000_p2 = pnand %p3999_p0, %p3993_p12 }
 0x268   : > { %4003 = shalt.err (!%p4000_p2)
}
 0x269   : > { %s4004_s9 = scalar_lea.hbm %s4783_s20, 512  ;;  %s4008_s10 = scalar_lea.hbm %s4847_s6, 3072 }
 0x26a   : > { %p4005_p3 = scmp.ne.s32.totalorder %s4783_s20, %s4004_s9  ;;  %p4009_p7 = scmp.lt.u32.totalorder %s4783_s20, %s4847_s6 }
 0x26b   : > { %p4010_p8 = scmp.lt.u32.totalorder %s4008_s10, %s4004_s9  ;;  %p4012_p10 = scmp.lt.u32.totalorder %s4004_s9, %s4783_s20 }
 0x26c   : > { %p4006_p5 = pnand %p4005_p3, %p4240_p11 }
 0x26d   : > { %p4011_p9 = por %p4010_p8, %p4009_p7 }
 0x26e   : > { %p4007_p6 = pneg %p4006_p5 }
 0x26f   : > { %p4013_p12 = por %p4012_p10, %p4011_p9 }
 0x271   : > { %p4014_p13 = pnand %p4013_p12, %p4007_p6 }
 0x273   : > { %4017 = shalt.err (!%p4014_p13)
}
 0x274   : > { %s4862_s25 = smov 128  }
 0x275   : > { %3741 = dma.vmem_to_hbm [thread:$0]  (%p4240_p11), %s4777_s21, 512, %s4783_s20, %s2775_s14, %s4862_s25, %s4101_s2, %s4102_s12  }
 0x276 PF: > { %p3752_p4 = scmp.ge.s32.totalorder %s4088_s8, 2  ;;  %s2822_s27 = sand.u32 1, %s4060_s24  }
 0x277   : > { %s2823_s9 = scalar_lea.sflag [#allocation8], %s2822_s27 }
 0x278   : > { %p3746_p0 = pnand %p3752_p4, %p4246_p1 }
 0x27a   : > { %4051 = dma.done.wait (!%p3746_p0), %s2823_s9, 512  }
 0x27b   : > { %4053 = vsyncadd (!%p3746_p0), %s2823_s9, 4294966784  ;;  %s2832_s15 = scalar_lea.sflag [#allocation10], %s2822_s27 }
 0x27c   : > { %4055 = dma.done.wait (!%p3746_p0), %s2832_s15, 512  }
 0x27d   : > { %4057 = vsyncadd (!%p3746_p0), %s2832_s15, 4294966784  ;;  %s4863_s17 = sld [smem:[#allocation14_spill]]  ;;  %s4864_s12 = sld [smem:[#allocation13_spill]] }
 0x27e   : > { %p21_p11 = scmp.ge.s32.totalorder %s4187_s11, 8   ;;  %s4865_s24 = smov %s4080_s29 }
 0x27f   : > { %s4866_s25 = smov %s4068_s26  ;;  %s4867_s26 = smov %s4229_s13 }
 0x280   : > { %s4868_s27 = smov %s4076_s28  ;;  %s4870_s29 = smov %s4084_s30 }
 0x281   : > { %s4872_s8 = smov %s4187_s11  ;;  %23 = sbr.rel (!%p21_p11) target bundleno = 9 (0x9), region = 294 }
 0x283   : > { %s4869_s28 = smov %s4863_s17  ;;  %s4871_s30 = smov %s4864_s12 }
 0x288   :  { %2837 = vsyncpa [#allocation8], 1 }
 0x289   :  { %2839 = vsyncpa [#allocation8 + $0x1], 1 }
 0x28a   :  { %2840 = vsyncpa [#allocation10], 1 }
 0x28b   :  { %2842 = vsyncpa [#allocation10 + $0x1], 1 }

</bundles_post_ra>
